<compile_context>
chip_gen: v5e
topology: v5e:2x2
jax: 0.10.0
libtpu: 0.0.40
codegen_flags: <defaults>
</compile_context>

<pallas_src>
import functools
import math

import jax
import jax.numpy as jnp
import numpy as np
from jax.experimental import pallas as pl
from jax.experimental.pallas import tpu as pltpu

NUM_HEADS = 8
LN_EPS = 1e-5
PE_NORMALIZE_FACTOR = 1.0 / 200.0


# ----------------------------- shared math helpers -----------------------------
def _round_up(x, m):
    return ((x + m - 1) // m) * m


def _layernorm(x, gamma, beta):
    mu = jnp.mean(x, axis=-1, keepdims=True)
    var = jnp.mean((x - mu) ** 2, axis=-1, keepdims=True)
    return (x - mu) * jax.lax.rsqrt(var + LN_EPS) * gamma + beta


def _erf_poly(x):
    # Abramowitz & Stegun 7.1.26, |err| <= 1.5e-7 -> exact-GELU semantics at f32 level.
    p = 0.3275911
    a1, a2, a3, a4, a5 = (0.254829592, -0.284496736, 1.421413741,
                          -1.453152027, 1.061405429)
    ax = jnp.abs(x)
    t = 1.0 / (1.0 + p * ax)          # tiny (bn, C) tensor; exact divide kept on purpose
    poly = ((((a5 * t + a4) * t + a3) * t + a2) * t + a1) * t
    y = 1.0 - poly * jnp.exp(-ax * ax)
    return jnp.where(x < 0.0, -y, y)


def _gelu_exact(x):
    # exact (erf-based) GELU, same as torch.nn.GELU() default
    return 0.5 * x * (1.0 + _erf_poly(x * (1.0 / math.sqrt(2.0))))


def linear_position_embedding_sine(coords, dim, normalize_factor=PE_NORMALIZE_FACTOR):
    # coords: [N, 2] (x, y). NOTE: 3.14 (not pi) intentionally matches FlowFormer reference.
    freq = jnp.arange(dim // 4, dtype=jnp.float32)
    ax = 3.14 * coords[:, 0:1] * freq * normalize_factor
    ay = 3.14 * coords[:, 1:2] * freq * normalize_factor
    return jnp.concatenate([jnp.sin(ax), jnp.cos(ax), jnp.sin(ay), jnp.cos(ay)], axis=-1)


# --------------------------------- Pallas kernel --------------------------------
def decoder_kernel(q_ref, pe_ref, mem_ref,
                   wkv_ref, bkv_ref, wcc_ref, vecs_ref,
                   es_ref, gsum_ref, ee_ref, ssum_ref,
                   x_out_ref, kv_out_ref,
                   *, m_tokens):
    bn, c = q_ref.shape
    mc = m_tokens * c

    # ---- fused k/v projection: (bn, M*Dc) @ block-diag (M*Dc, 2*M*C) ----
    # Result is already in the flat, lane-dense layout kv[:, m*C + ch] (k) / [MC + m*C + ch] (v),
    # and is stored as one lane-dense slab (last dim 2*M*C, a multiple of 128).
    kv = (jnp.dot(mem_ref[...], wkv_ref[...], preferred_element_type=jnp.float32)
          + bkv_ref[...])
    kv_out_ref[...] = kv.astype(kv_out_ref.dtype)
    k_flat = kv[:, :mc]          # (bn, M*C)
    v_flat = kv[:, mc:]          # (bn, M*C)

    # ---- packed weights (static row slices of resident VMEM slabs) ----
    wcc = wcc_ref[...]
    wq, wp = wcc[0 * c:1 * c], wcc[1 * c:2 * c]
    wf1, wf2 = wcc[2 * c:3 * c], wcc[3 * c:4 * c]
    vecs = vecs_ref[...]
    bq, bp, bf1, bf2 = vecs[0:1], vecs[1:2], vecs[2:3], vecs[3:4]
    g1, be1, g2, be2 = vecs[4:5], vecs[5:6], vecs[6:7], vecs[7:8]

    # ---- q projection: LayerNorm(query) + positional encoding (flow_or_pe == 'and') ----
    q_in = q_ref[...]
    qn = _layernorm(q_in, g1, be1)
    q = jnp.dot(qn + pe_ref[...], wq, preferred_element_type=jnp.float32) + bq

    # ---- multi-head attention, all heads fused (no per-head loop, no masks) ----
    # q replicated along lanes to match the flat k layout; all contractions are MXU matmuls
    # against small constant matrices, all intermediates stay 2-D (no relayout reshapes).
    q_rep = jnp.concatenate([q] * m_tokens, axis=-1)                      # (bn, M*C)
    s = jnp.dot(q_rep * k_flat, es_ref[...],
                preferred_element_type=jnp.float32)                        # (bn, H*M), scale folded in
    # Row-global max subtraction keeps every per-head group's exp <= 1 (exact after
    # per-head normalization below).
    s = s - jnp.max(s, axis=-1, keepdims=True)
    e = jnp.exp(s)
    denom = jnp.dot(e, gsum_ref[...], preferred_element_type=jnp.float32)  # per-head sum, broadcast
    denom = jnp.maximum(denom, 1e-30)                                      # guard (no NaN on underflow)
    inv = pl.reciprocal(denom, approx=True)
    inv = inv * (2.0 - denom * inv)      # one Newton step -> ~f32 accuracy, stays off the divide path
    attn = e * inv                                                         # (bn, H*M)
    attn_exp = jnp.dot(attn, ee_ref[...], preferred_element_type=jnp.float32)   # (bn, M*C)
    attn_out = jnp.dot(attn_exp * v_flat, ssum_ref[...],
                       preferred_element_type=jnp.float32)                 # (bn, C)

    # ---- proj + short cut (no_sc=False, proj_drop=0) ----
    x = jnp.dot(attn_out, wp, preferred_element_type=jnp.float32) + bp
    x = q_in + x

    # ---- FFN: Linear -> GELU -> Linear, residual (dropout/drop_path identity at 0.0) ----
    xn = _layernorm(x, g2, be2)
    h1 = _gelu_exact(jnp.dot(xn, wf1, preferred_element_type=jnp.float32) + bf1)
    x = x + jnp.dot(h1, wf2, preferred_element_type=jnp.float32) + bf2

    x_out_ref[...] = x.astype(x_out_ref.dtype)


# ------------------------- constant "structural" matrices ------------------------
def _attention_constants(M, C, H):
    """Constant matrices that fuse the per-head attention into plain 2-D matmuls."""
    hd = C // H
    scale = float(hd) ** -0.5
    MC, HM = M * C, H * M
    mm, hh, dd = np.meshgrid(np.arange(M), np.arange(H), np.arange(hd), indexing="ij")
    rows = (mm * C + hh * hd + dd).ravel()      # flat channel index  m*C + h*hd + d
    cols = (hh * M + mm).ravel()                # flat score index    h*M + m
    es = np.zeros((MC, HM), np.float32)         # score pooling (scale folded in)
    es[rows, cols] = scale
    ee = np.zeros((HM, MC), np.float32)         # expand attn weights back to channels
    ee[cols, rows] = 1.0
    gsum = np.kron(np.eye(H, dtype=np.float32), np.ones((M, M), np.float32))  # per-head sum bcast
    ssum = np.tile(np.eye(C, dtype=np.float32), (M, 1))                        # sum over memory tokens
    return (jnp.asarray(es), jnp.asarray(gsum), jnp.asarray(ee), jnp.asarray(ssum))


# ----------------------------------- wrapper ------------------------------------
def memory_decoder_layer(query, key, value, memory, coords1, size, params,
                         *, block_n=512, kv_dtype=jnp.float32):
    """query: [N,1,C], memory: [N,M,Dc], coords1: [B,2,H1,W1]. Returns (x_global NCHW, k, v)."""
    del key, value, size   # key/value == None path; k, v computed from memory in the kernel
    B, _, H1, W1 = coords1.shape
    N, M, Dc = memory.shape
    C = query.shape[-1]
    assert N == B * H1 * W1 and C % NUM_HEADS == 0
    MC = M * C

    # --- glue (cheap, outside the hot kernel): PE, flattening, weight fusion/packing ---
    coords_flat = coords1.reshape(B, 2, H1 * W1).transpose(0, 2, 1).reshape(N, 2)
    pe_enc = linear_position_embedding_sine(coords_flat, C)
    q2d = query.reshape(N, C)
    mem_flat = memory.reshape(N, M * Dc)                       # lane-dense memory input

    eye_m = jnp.eye(M, dtype=jnp.float32)
    w_kv = jnp.concatenate([jnp.kron(eye_m, params["wk"]),     # block-diag fused k|v weight
                            jnp.kron(eye_m, params["wv"])], axis=1)      # (M*Dc, 2*M*C)
    b_kv = jnp.concatenate([jnp.tile(params["bk"], (1, M)),
                            jnp.tile(params["bv"], (1, M))], axis=1)     # (1, 2*M*C)
    w_cc = jnp.concatenate([params["wq"], params["wp"],
                            params["wf1"], params["wf2"]], axis=0)       # (4C, C)
    vecs = jnp.concatenate([params["bq"], params["bp"], params["bf1"], params["bf2"],
                            params["g1"], params["be1"], params["g2"], params["be2"]],
                           axis=0)                                        # (8, C)
    es, gsum, ee, ssum = _attention_constants(M, C, NUM_HEADS)

    # --- pad N so any block_n works (no divisibility requirement), slice outputs back ---
    block_n = max(8, min(block_n, _round_up(N, 8)))
    n_pad = _round_up(N, block_n)
    if n_pad != N:
        pad = ((0, n_pad - N), (0, 0))
        q2d = jnp.pad(q2d, pad)
        pe_enc = jnp.pad(pe_enc, pad)
        mem_flat = jnp.pad(mem_flat, pad)

    def _full(a):
        nd = a.ndim
        return pl.BlockSpec(a.shape, lambda i, _nd=nd: (0,) * _nd)

    grid = (n_pad // block_n,)
    in_specs = [
        pl.BlockSpec((block_n, C), lambda i: (i, 0)),
        pl.BlockSpec((block_n, C), lambda i: (i, 0)),
        pl.BlockSpec((block_n, M * Dc), lambda i: (i, 0)),
        _full(w_kv), _full(b_kv), _full(w_cc), _full(vecs),
        _full(es), _full(gsum), _full(ee), _full(ssum),
    ]
    out_specs = [
        pl.BlockSpec((block_n, C), lambda i: (i, 0)),
        pl.BlockSpec((block_n, 2 * MC), lambda i: (i, 0)),     # lane-dense k|v slab
    ]
    out_shape = (
        jax.ShapeDtypeStruct((n_pad, C), jnp.float32),
        jax.ShapeDtypeStruct((n_pad, 2 * MC), kv_dtype),
    )

    kernel = functools.partial(decoder_kernel, m_tokens=M)
    x, kv = pl.pallas_call(
        kernel,
        grid=grid,
        in_specs=in_specs,
        out_specs=out_specs,
        out_shape=out_shape,
        compiler_params=pltpu.CompilerParams(dimension_semantics=("parallel",)),
    )(q2d, pe_enc, mem_flat, w_kv, b_kv, w_cc, vecs, es, gsum, ee, ssum)

    x = x[:N]
    k_out = kv[:N, :MC].reshape(N, M, C)       # free metadata reshapes in the wrapper
    v_out = kv[:N, MC:].reshape(N, M, C)
    x_global = x.reshape(B, H1, W1, C).transpose(0, 3, 1, 2)   # -> [B, C, H1, W1] (NCHW)
    return x_global, k_out, v_out


# ------------------------------- pure-JAX reference ------------------------------
def reference_forward(query, memory, coords1, p):
    B, _, H1, W1 = coords1.shape
    N, M, Dc = memory.shape
    C = query.shape[-1]
    hd = C // NUM_HEADS
    coords_flat = coords1.reshape(B, 2, H1 * W1).transpose(0, 2, 1).reshape(N, 2)
    pe = linear_position_embedding_sine(coords_flat, C)
    k = (memory.reshape(N * M, Dc) @ p["wk"] + p["bk"]).reshape(N, M, C)
    v = (memory.reshape(N * M, Dc) @ p["wv"] + p["bv"]).reshape(N, M, C)
    q_in = query.reshape(N, C)
    qn = _layernorm(q_in, p["g1"], p["be1"])
    q = (qn + pe) @ p["wq"] + p["bq"]
    qh = q.reshape(N, NUM_HEADS, hd)
    kh = k.reshape(N, M, NUM_HEADS, hd)
    vh = v.reshape(N, M, NUM_HEADS, hd)
    s = jnp.einsum("nhd,nmhd->nhm", qh, kh) * (hd ** -0.5)
    a = jax.nn.softmax(s, axis=-1)
    o = jnp.einsum("nhm,nmhd->nhd", a, vh).reshape(N, C)
    x = o @ p["wp"] + p["bp"]
    x = q_in + x
    xn = _layernorm(x, p["g2"], p["be2"])
    h1 = jax.nn.gelu(xn @ p["wf1"] + p["bf1"], approximate=False)
    x = x + (h1 @ p["wf2"] + p["bf2"])
    x_global = x.reshape(B, H1, W1, C).transpose(0, 3, 1, 2)
    return x_global, k, v


# ------------------------------------- main --------------------------------------
if __name__ == "__main__":
    B, H1, W1 = 2, 4, 4
    C = 32          # query_latent_dim == qk_dim == v_dim == query_token_dim
    Dc = 16         # cost_latent_dim == tgt_token_dim
    M = 8           # H2'*W2' cost tokens per query (cost_latent_token_num)
    N = B * H1 * W1

    key0 = jax.random.PRNGKey(0)
    ks = jax.random.split(key0, 12)

    def lin_init(k, din, dout):
        kw, kb = jax.random.split(k)
        bound = 1.0 / math.sqrt(din)
        w = jax.random.uniform(kw, (din, dout), jnp.float32, -bound, bound)
        b = jax.random.uniform(kb, (1, dout), jnp.float32, -bound, bound)
        return w, b

    wk, bk = lin_init(ks[0], Dc, C)
    wv, bv = lin_init(ks[1], Dc, C)
    wq, bq = lin_init(ks[2], C, C)
    wp, bp = lin_init(ks[3], C, C)
    wf1, bf1 = lin_init(ks[4], C, C)
    wf2, bf2 = lin_init(ks[5], C, C)
    params = dict(
        wk=wk, bk=bk, wv=wv, bv=bv, wq=wq, bq=bq,
        g1=jnp.ones((1, C), jnp.float32), be1=jnp.zeros((1, C), jnp.float32),
        wp=wp, bp=bp,
        g2=jnp.ones((1, C), jnp.float32), be2=jnp.zeros((1, C), jnp.float32),
        wf1=wf1, bf1=bf1, wf2=wf2, bf2=bf2,
    )

    query = jax.random.normal(ks[6], (N, 1, C), jnp.float32)
    memory = jax.random.normal(ks[7], (N, M, Dc), jnp.float32)
    ys, xs = jnp.meshgrid(jnp.arange(H1, dtype=jnp.float32),
                          jnp.arange(W1, dtype=jnp.float32), indexing="ij")
    base = jnp.stack([xs, ys], axis=0)[None]                       # [1,2,H1,W1]
    coords1 = jnp.broadcast_to(base, (B, 2, H1, W1)) + \
        0.5 * jax.random.normal(ks[8], (B, 2, H1, W1), jnp.float32)
    size = (B, C, H1, W1)

    x_global, k_out, v_out = memory_decoder_layer(query, None, None, memory,
                                                  coords1, size, params)
    jax.block_until_ready((x_global, k_out, v_out))

    x_ref, k_ref, v_ref = reference_forward(query, memory, coords1, params)
    assert x_global.shape == (B, C, H1, W1)
    np.testing.assert_allclose(np.asarray(k_out), np.asarray(k_ref), rtol=2e-4, atol=2e-4)
    np.testing.assert_allclose(np.asarray(v_out), np.asarray(v_ref), rtol=2e-4, atol=2e-4)
    np.testing.assert_allclose(np.asarray(x_global), np.asarray(x_ref), rtol=5e-4, atol=5e-4)
    print("KERNEL_OK")
</pallas_src>

<mosaic_0001>
module attributes {stable_mosaic.version = 11 : i64} {
  func.func @decoder_kernel(%arg0: i32, %arg1: memref<32x32xf32, #tpu.memory_space<vmem>>, %arg2: memref<32x32xf32, #tpu.memory_space<vmem>>, %arg3: memref<32x128xf32, #tpu.memory_space<vmem>>, %arg4: memref<128x512xf32, #tpu.memory_space<vmem>>, %arg5: memref<1x512xf32, #tpu.memory_space<vmem>>, %arg6: memref<128x32xf32, #tpu.memory_space<vmem>>, %arg7: memref<8x32xf32, #tpu.memory_space<vmem>>, %arg8: memref<256x64xf32, #tpu.memory_space<vmem>>, %arg9: memref<64x64xf32, #tpu.memory_space<vmem>>, %arg10: memref<64x256xf32, #tpu.memory_space<vmem>>, %arg11: memref<256x32xf32, #tpu.memory_space<vmem>>, %arg12: memref<32x32xf32, #tpu.memory_space<vmem>>, %arg13: memref<32x512xf32, #tpu.memory_space<vmem>>) attributes {dimension_semantics = [#tpu.dimension_semantics<parallel>], iteration_bounds = array<i64: 1>, scalar_prefetch = 0 : i64, scratch_operands = 0 : i64, tpu.core_type = #tpu.core_type<tc>, window_params = [{transform_indices = @transform_0, window_bounds = array<i64: 32, 32>}, {transform_indices = @transform_1, window_bounds = array<i64: 32, 32>}, {transform_indices = @transform_2, window_bounds = array<i64: 32, 128>}, {pipeline_mode = #tpu.pipeline_mode<synchronous>, transform_indices = @transform_3, window_bounds = array<i64: 128, 512>}, {pipeline_mode = #tpu.pipeline_mode<synchronous>, transform_indices = @transform_4, window_bounds = array<i64: 1, 512>}, {pipeline_mode = #tpu.pipeline_mode<synchronous>, transform_indices = @transform_5, window_bounds = array<i64: 128, 32>}, {pipeline_mode = #tpu.pipeline_mode<synchronous>, transform_indices = @transform_6, window_bounds = array<i64: 8, 32>}, {pipeline_mode = #tpu.pipeline_mode<synchronous>, transform_indices = @transform_7, window_bounds = array<i64: 256, 64>}, {pipeline_mode = #tpu.pipeline_mode<synchronous>, transform_indices = @transform_8, window_bounds = array<i64: 64, 64>}, {pipeline_mode = #tpu.pipeline_mode<synchronous>, transform_indices = @transform_9, window_bounds = array<i64: 64, 256>}, {pipeline_mode = #tpu.pipeline_mode<synchronous>, transform_indices = @transform_10, window_bounds = array<i64: 256, 32>}, {transform_indices = @transform_11, window_bounds = array<i64: 32, 32>}, {transform_indices = @transform_12, window_bounds = array<i64: 32, 512>}]} {
    %c0 = arith.constant 0 : index
    %c0_0 = arith.constant 0 : index
    %0 = vector.load %arg3[%c0, %c0_0] : memref<32x128xf32, #tpu.memory_space<vmem>>, vector<32x128xf32>
    %c0_1 = arith.constant 0 : index
    %c0_2 = arith.constant 0 : index
    %1 = vector.load %arg4[%c0_1, %c0_2] : memref<128x512xf32, #tpu.memory_space<vmem>>, vector<128x512xf32>
    %cst = arith.constant dense<0.000000e+00> : vector<32x512xf32>
    %2 = tpu.matmul %0, %1, %cst {dimension_numbers = #tpu.dot_dimension_numbers<[1], [0], [0], [1], [0, 0, 1, 1], [], []>} : vector<32x128xf32>, vector<128x512xf32>, vector<32x512xf32> -> vector<32x512xf32>
    %c0_3 = arith.constant 0 : index
    %c0_4 = arith.constant 0 : index
    %3 = vector.load %arg5[%c0_3, %c0_4] : memref<1x512xf32, #tpu.memory_space<vmem>>, vector<1x512xf32>
    %4 = vector.broadcast %3 : vector<1x512xf32> to vector<32x512xf32>
    %5 = arith.addf %2, %4 : vector<32x512xf32>
    %c0_5 = arith.constant 0 : index
    %c0_6 = arith.constant 0 : index
    %6 = vector.load %arg13[%c0_5, %c0_6] : memref<32x512xf32, #tpu.memory_space<vmem>>, vector<32x512xf32>
    tpu.vector_store %arg13[%c0_5, %c0_6], %5 {strides = array<i32>} : memref<32x512xf32, #tpu.memory_space<vmem>>, vector<32x512xf32>,
    %7 = vector.extract_strided_slice %5 {offsets = [0, 0], sizes = [32, 256], strides = [1, 1]} : vector<32x512xf32> to vector<32x256xf32>
    %8 = vector.extract_strided_slice %5 {offsets = [0, 256], sizes = [32, 256], strides = [1, 1]} : vector<32x512xf32> to vector<32x256xf32>
    %c0_7 = arith.constant 0 : index
    %c0_8 = arith.constant 0 : index
    %9 = vector.load %arg6[%c0_7, %c0_8] : memref<128x32xf32, #tpu.memory_space<vmem>>, vector<128x32xf32>
    %10 = vector.extract_strided_slice %9 {offsets = [0, 0], sizes = [32, 32], strides = [1, 1]} : vector<128x32xf32> to vector<32x32xf32>
    %11 = vector.extract_strided_slice %9 {offsets = [32, 0], sizes = [32, 32], strides = [1, 1]} : vector<128x32xf32> to vector<32x32xf32>
    %12 = vector.extract_strided_slice %9 {offsets = [64, 0], sizes = [32, 32], strides = [1, 1]} : vector<128x32xf32> to vector<32x32xf32>
    %13 = vector.extract_strided_slice %9 {offsets = [96, 0], sizes = [32, 32], strides = [1, 1]} : vector<128x32xf32> to vector<32x32xf32>
    %c0_9 = arith.constant 0 : index
    %c0_10 = arith.constant 0 : index
    %14 = vector.load %arg7[%c0_9, %c0_10] : memref<8x32xf32, #tpu.memory_space<vmem>>, vector<8x32xf32>
    %15 = vector.extract_strided_slice %14 {offsets = [0, 0], sizes = [1, 32], strides = [1, 1]} : vector<8x32xf32> to vector<1x32xf32>
    %16 = vector.extract_strided_slice %14 {offsets = [1, 0], sizes = [1, 32], strides = [1, 1]} : vector<8x32xf32> to vector<1x32xf32>
    %17 = vector.extract_strided_slice %14 {offsets = [2, 0], sizes = [1, 32], strides = [1, 1]} : vector<8x32xf32> to vector<1x32xf32>
    %18 = vector.extract_strided_slice %14 {offsets = [3, 0], sizes = [1, 32], strides = [1, 1]} : vector<8x32xf32> to vector<1x32xf32>
    %19 = vector.extract_strided_slice %14 {offsets = [4, 0], sizes = [1, 32], strides = [1, 1]} : vector<8x32xf32> to vector<1x32xf32>
    %20 = vector.extract_strided_slice %14 {offsets = [5, 0], sizes = [1, 32], strides = [1, 1]} : vector<8x32xf32> to vector<1x32xf32>
    %21 = vector.extract_strided_slice %14 {offsets = [6, 0], sizes = [1, 32], strides = [1, 1]} : vector<8x32xf32> to vector<1x32xf32>
    %22 = vector.extract_strided_slice %14 {offsets = [7, 0], sizes = [1, 32], strides = [1, 1]} : vector<8x32xf32> to vector<1x32xf32>
    %c0_11 = arith.constant 0 : index
    %c0_12 = arith.constant 0 : index
    %23 = vector.load %arg1[%c0_11, %c0_12] : memref<32x32xf32, #tpu.memory_space<vmem>>, vector<32x32xf32>
    %cst_13 = arith.constant dense<0.000000e+00> : vector<32xf32>
    %24 = vector.multi_reduction <add>, %23, %cst_13 [1] : vector<32x32xf32> to vector<32xf32>
    %25 = vector.shape_cast %24 : vector<32xf32> to vector<32x1xf32>
    %cst_14 = arith.constant 3.200000e+01 : f32
    %26 = vector.broadcast %cst_14 : f32 to vector<32x1xf32>
    %27 = arith.divf %25, %26 : vector<32x1xf32>
    %28 = vector.broadcast %27 : vector<32x1xf32> to vector<32x32xf32>
    %29 = arith.subf %23, %28 : vector<32x32xf32>
    %30 = arith.mulf %29, %29 : vector<32x32xf32>
    %cst_15 = arith.constant dense<0.000000e+00> : vector<32xf32>
    %31 = vector.multi_reduction <add>, %30, %cst_15 [1] : vector<32x32xf32> to vector<32xf32>
    %32 = vector.shape_cast %31 : vector<32xf32> to vector<32x1xf32>
    %cst_16 = arith.constant 3.200000e+01 : f32
    %33 = vector.broadcast %cst_16 : f32 to vector<32x1xf32>
    %34 = arith.divf %32, %33 : vector<32x1xf32>
    %35 = vector.broadcast %27 : vector<32x1xf32> to vector<32x32xf32>
    %36 = arith.subf %23, %35 : vector<32x32xf32>
    %cst_17 = arith.constant 9.99999974E-6 : f32
    %37 = vector.broadcast %cst_17 : f32 to vector<32x1xf32>
    %38 = arith.addf %34, %37 : vector<32x1xf32>
    %39 = math.rsqrt %38 : vector<32x1xf32>
    %40 = vector.broadcast %39 : vector<32x1xf32> to vector<32x32xf32>
    %41 = arith.mulf %36, %40 : vector<32x32xf32>
    %42 = vector.broadcast %19 : vector<1x32xf32> to vector<32x32xf32>
    %43 = arith.mulf %41, %42 : vector<32x32xf32>
    %44 = vector.broadcast %20 : vector<1x32xf32> to vector<32x32xf32>
    %45 = arith.addf %43, %44 : vector<32x32xf32>
    %c0_18 = arith.constant 0 : index
    %c0_19 = arith.constant 0 : index
    %46 = vector.load %arg2[%c0_18, %c0_19] : memref<32x32xf32, #tpu.memory_space<vmem>>, vector<32x32xf32>
    %47 = arith.addf %45, %46 : vector<32x32xf32>
    %cst_20 = arith.constant dense<0.000000e+00> : vector<32x32xf32>
    %48 = tpu.matmul %47, %10, %cst_20 {dimension_numbers = #tpu.dot_dimension_numbers<[1], [0], [0], [1], [0, 0, 1, 1], [], []>} : vector<32x32xf32>, vector<32x32xf32>, vector<32x32xf32> -> vector<32x32xf32>
    %49 = vector.broadcast %15 : vector<1x32xf32> to vector<32x32xf32>
    %50 = arith.addf %48, %49 : vector<32x32xf32>
    %51 = tpu.concatenate %50, %50, %50, %50, %50, %50, %50, %50 in 1 : vector<32x32xf32>, vector<32x32xf32>, vector<32x32xf32>, vector<32x32xf32>, vector<32x32xf32>, vector<32x32xf32>, vector<32x32xf32>, vector<32x32xf32> -> vector<32x256xf32>
    %52 = arith.mulf %51, %7 : vector<32x256xf32>
    %c0_21 = arith.constant 0 : index
    %c0_22 = arith.constant 0 : index
    %53 = vector.load %arg8[%c0_21, %c0_22] : memref<256x64xf32, #tpu.memory_space<vmem>>, vector<256x64xf32>
    %cst_23 = arith.constant dense<0.000000e+00> : vector<32x64xf32>
    %54 = tpu.matmul %52, %53, %cst_23 {dimension_numbers = #tpu.dot_dimension_numbers<[1], [0], [0], [1], [0, 0, 1, 1], [], []>} : vector<32x256xf32>, vector<256x64xf32>, vector<32x64xf32> -> vector<32x64xf32>
    %cst_24 = arith.constant dense<0xFF800000> : vector<32xf32>
    %55 = vector.multi_reduction <maximumf>, %54, %cst_24 [1] : vector<32x64xf32> to vector<32xf32>
    %56 = vector.shape_cast %55 : vector<32xf32> to vector<32x1xf32>
    %57 = vector.broadcast %56 : vector<32x1xf32> to vector<32x64xf32>
    %58 = arith.subf %54, %57 : vector<32x64xf32>
    %59 = math.exp %58 : vector<32x64xf32>
    %c0_25 = arith.constant 0 : index
    %c0_26 = arith.constant 0 : index
    %60 = vector.load %arg9[%c0_25, %c0_26] : memref<64x64xf32, #tpu.memory_space<vmem>>, vector<64x64xf32>
    %cst_27 = arith.constant dense<0.000000e+00> : vector<32x64xf32>
    %61 = tpu.matmul %59, %60, %cst_27 {dimension_numbers = #tpu.dot_dimension_numbers<[1], [0], [0], [1], [0, 0, 1, 1], [], []>} : vector<32x64xf32>, vector<64x64xf32>, vector<32x64xf32> -> vector<32x64xf32>
    %cst_28 = arith.constant 1.000000e-30 : f32
    %62 = vector.broadcast %cst_28 : f32 to vector<32x64xf32>
    %63 = arith.maximumf %61, %62 : vector<32x64xf32>
    %64 = tpu.reciprocal %63 {approx = true} : vector<32x64xf32> -> vector<32x64xf32>
    %65 = arith.mulf %63, %64 : vector<32x64xf32>
    %cst_29 = arith.constant 2.000000e+00 : f32
    %66 = vector.broadcast %cst_29 : f32 to vector<32x64xf32>
    %67 = arith.subf %66, %65 : vector<32x64xf32>
    %68 = arith.mulf %64, %67 : vector<32x64xf32>
    %69 = arith.mulf %59, %68 : vector<32x64xf32>
    %c0_30 = arith.constant 0 : index
    %c0_31 = arith.constant 0 : index
    %70 = vector.load %arg10[%c0_30, %c0_31] : memref<64x256xf32, #tpu.memory_space<vmem>>, vector<64x256xf32>
    %cst_32 = arith.constant dense<0.000000e+00> : vector<32x256xf32>
    %71 = tpu.matmul %69, %70, %cst_32 {dimension_numbers = #tpu.dot_dimension_numbers<[1], [0], [0], [1], [0, 0, 1, 1], [], []>} : vector<32x64xf32>, vector<64x256xf32>, vector<32x256xf32> -> vector<32x256xf32>
    %72 = arith.mulf %71, %8 : vector<32x256xf32>
    %c0_33 = arith.constant 0 : index
    %c0_34 = arith.constant 0 : index
    %73 = vector.load %arg11[%c0_33, %c0_34] : memref<256x32xf32, #tpu.memory_space<vmem>>, vector<256x32xf32>
    %cst_35 = arith.constant dense<0.000000e+00> : vector<32x32xf32>
    %74 = tpu.matmul %72, %73, %cst_35 {dimension_numbers = #tpu.dot_dimension_numbers<[1], [0], [0], [1], [0, 0, 1, 1], [], []>} : vector<32x256xf32>, vector<256x32xf32>, vector<32x32xf32> -> vector<32x32xf32>
    %cst_36 = arith.constant dense<0.000000e+00> : vector<32x32xf32>
    %75 = tpu.matmul %74, %11, %cst_36 {dimension_numbers = #tpu.dot_dimension_numbers<[1], [0], [0], [1], [0, 0, 1, 1], [], []>} : vector<32x32xf32>, vector<32x32xf32>, vector<32x32xf32> -> vector<32x32xf32>
    %76 = vector.broadcast %16 : vector<1x32xf32> to vector<32x32xf32>
    %77 = arith.addf %75, %76 : vector<32x32xf32>
    %78 = arith.addf %23, %77 : vector<32x32xf32>
    %cst_37 = arith.constant dense<0.000000e+00> : vector<32xf32>
    %79 = vector.multi_reduction <add>, %78, %cst_37 [1] : vector<32x32xf32> to vector<32xf32>
    %80 = vector.shape_cast %79 : vector<32xf32> to vector<32x1xf32>
    %cst_38 = arith.constant 3.200000e+01 : f32
    %81 = vector.broadcast %cst_38 : f32 to vector<32x1xf32>
    %82 = arith.divf %80, %81 : vector<32x1xf32>
    %83 = vector.broadcast %82 : vector<32x1xf32> to vector<32x32xf32>
    %84 = arith.subf %78, %83 : vector<32x32xf32>
    %85 = arith.mulf %84, %84 : vector<32x32xf32>
    %cst_39 = arith.constant dense<0.000000e+00> : vector<32xf32>
    %86 = vector.multi_reduction <add>, %85, %cst_39 [1] : vector<32x32xf32> to vector<32xf32>
    %87 = vector.shape_cast %86 : vector<32xf32> to vector<32x1xf32>
    %cst_40 = arith.constant 3.200000e+01 : f32
    %88 = vector.broadcast %cst_40 : f32 to vector<32x1xf32>
    %89 = arith.divf %87, %88 : vector<32x1xf32>
    %90 = vector.broadcast %82 : vector<32x1xf32> to vector<32x32xf32>
    %91 = arith.subf %78, %90 : vector<32x32xf32>
    %cst_41 = arith.constant 9.99999974E-6 : f32
    %92 = vector.broadcast %cst_41 : f32 to vector<32x1xf32>
    %93 = arith.addf %89, %92 : vector<32x1xf32>
    %94 = math.rsqrt %93 : vector<32x1xf32>
    %95 = vector.broadcast %94 : vector<32x1xf32> to vector<32x32xf32>
    %96 = arith.mulf %91, %95 : vector<32x32xf32>
    %97 = vector.broadcast %21 : vector<1x32xf32> to vector<32x32xf32>
    %98 = arith.mulf %96, %97 : vector<32x32xf32>
    %99 = vector.broadcast %22 : vector<1x32xf32> to vector<32x32xf32>
    %100 = arith.addf %98, %99 : vector<32x32xf32>
    %cst_42 = arith.constant dense<0.000000e+00> : vector<32x32xf32>
    %101 = tpu.matmul %100, %12, %cst_42 {dimension_numbers = #tpu.dot_dimension_numbers<[1], [0], [0], [1], [0, 0, 1, 1], [], []>} : vector<32x32xf32>, vector<32x32xf32>, vector<32x32xf32> -> vector<32x32xf32>
    %102 = vector.broadcast %17 : vector<1x32xf32> to vector<32x32xf32>
    %103 = arith.addf %101, %102 : vector<32x32xf32>
    %cst_43 = arith.constant 5.000000e-01 : f32
    %104 = vector.broadcast %cst_43 : f32 to vector<32x32xf32>
    %105 = arith.mulf %104, %103 : vector<32x32xf32>
    %cst_44 = arith.constant 0.707106769 : f32
    %106 = vector.broadcast %cst_44 : f32 to vector<32x32xf32>
    %107 = arith.mulf %103, %106 : vector<32x32xf32>
    %108 = math.absf %107 : vector<32x32xf32>
    %cst_45 = arith.constant 0.327591091 : f32
    %109 = vector.broadcast %cst_45 : f32 to vector<32x32xf32>
    %110 = arith.mulf %109, %108 : vector<32x32xf32>
    %cst_46 = arith.constant 1.000000e+00 : f32
    %111 = vector.broadcast %cst_46 : f32 to vector<32x32xf32>
    %112 = arith.addf %111, %110 : vector<32x32xf32>
    %cst_47 = arith.constant 1.000000e+00 : f32
    %113 = vector.broadcast %cst_47 : f32 to vector<32x32xf32>
    %114 = arith.divf %113, %112 : vector<32x32xf32>
    %cst_48 = arith.constant 1.06140542 : f32
    %115 = vector.broadcast %cst_48 : f32 to vector<32x32xf32>
    %116 = arith.mulf %115, %114 : vector<32x32xf32>
    %cst_49 = arith.constant -1.45315206 : f32
    %117 = vector.broadcast %cst_49 : f32 to vector<32x32xf32>
    %118 = arith.addf %116, %117 : vector<32x32xf32>
    %119 = arith.mulf %118, %114 : vector<32x32xf32>
    %cst_50 = arith.constant 1.42141378 : f32
    %120 = vector.broadcast %cst_50 : f32 to vector<32x32xf32>
    %121 = arith.addf %119, %120 : vector<32x32xf32>
    %122 = arith.mulf %121, %114 : vector<32x32xf32>
    %cst_51 = arith.constant -0.284496725 : f32
    %123 = vector.broadcast %cst_51 : f32 to vector<32x32xf32>
    %124 = arith.addf %122, %123 : vector<32x32xf32>
    %125 = arith.mulf %124, %114 : vector<32x32xf32>
    %cst_52 = arith.constant 0.254829586 : f32
    %126 = vector.broadcast %cst_52 : f32 to vector<32x32xf32>
    %127 = arith.addf %125, %126 : vector<32x32xf32>
    %128 = arith.mulf %127, %114 : vector<32x32xf32>
    %cst_53 = arith.constant 0.000000e+00 : f32
    %129 = vector.broadcast %cst_53 : f32 to vector<32x32xf32>
    %130 = arith.subf %129, %108 : vector<32x32xf32>
    %131 = arith.mulf %130, %108 : vector<32x32xf32>
    %132 = math.exp %131 : vector<32x32xf32>
    %133 = arith.mulf %128, %132 : vector<32x32xf32>
    %cst_54 = arith.constant 1.000000e+00 : f32
    %134 = vector.broadcast %cst_54 : f32 to vector<32x32xf32>
    %135 = arith.subf %134, %133 : vector<32x32xf32>
    %cst_55 = arith.constant 0.000000e+00 : f32
    %136 = vector.broadcast %cst_55 : f32 to vector<32x32xf32>
    %137 = arith.cmpf olt, %107, %136 : vector<32x32xf32>
    %cst_56 = arith.constant 0.000000e+00 : f32
    %138 = vector.broadcast %cst_56 : f32 to vector<32x32xf32>
    %139 = arith.subf %138, %135 : vector<32x32xf32>
    %140 = arith.select %137, %139, %135 : vector<32x32xi1>, vector<32x32xf32>
    %cst_57 = arith.constant 1.000000e+00 : f32
    %141 = vector.broadcast %cst_57 : f32 to vector<32x32xf32>
    %142 = arith.addf %141, %140 : vector<32x32xf32>
    %143 = arith.mulf %105, %142 : vector<32x32xf32>
    %cst_58 = arith.constant dense<0.000000e+00> : vector<32x32xf32>
    %144 = tpu.matmul %143, %13, %cst_58 {dimension_numbers = #tpu.dot_dimension_numbers<[1], [0], [0], [1], [0, 0, 1, 1], [], []>} : vector<32x32xf32>, vector<32x32xf32>, vector<32x32xf32> -> vector<32x32xf32>
    %145 = arith.addf %78, %144 : vector<32x32xf32>
    %146 = vector.broadcast %18 : vector<1x32xf32> to vector<32x32xf32>
    %147 = arith.addf %145, %146 : vector<32x32xf32>
    %c0_59 = arith.constant 0 : index
    %c0_60 = arith.constant 0 : index
    %148 = vector.load %arg12[%c0_59, %c0_60] : memref<32x32xf32, #tpu.memory_space<vmem>>, vector<32x32xf32>
    tpu.vector_store %arg12[%c0_59, %c0_60], %147 {strides = array<i32>} : memref<32x32xf32, #tpu.memory_space<vmem>>, vector<32x32xf32>,
    return
  }
  func.func @transform_0(%arg0: i32) -> (i32, i32) {
    %c0_i32 = arith.constant 0 : i32
    %c0_i32_0 = arith.constant 0 : i32
    return %arg0, %c0_i32 : i32, i32
  }
  func.func @transform_1(%arg0: i32) -> (i32, i32) {
    %c0_i32 = arith.constant 0 : i32
    %c0_i32_0 = arith.constant 0 : i32
    return %arg0, %c0_i32 : i32, i32
  }
  func.func @transform_2(%arg0: i32) -> (i32, i32) {
    %c0_i32 = arith.constant 0 : i32
    %c0_i32_0 = arith.constant 0 : i32
    return %arg0, %c0_i32 : i32, i32
  }
  func.func @transform_3(%arg0: i32) -> (i32, i32) {
    %c0_i32 = arith.constant 0 : i32
    %c0_i32_0 = arith.constant 0 : i32
    %c0_i32_1 = arith.constant 0 : i32
    return %c0_i32, %c0_i32_0 : i32, i32
  }
  func.func @transform_4(%arg0: i32) -> (i32, i32) {
    %c0_i32 = arith.constant 0 : i32
    %c0_i32_0 = arith.constant 0 : i32
    %c0_i32_1 = arith.constant 0 : i32
    return %c0_i32, %c0_i32_0 : i32, i32
  }
  func.func @transform_5(%arg0: i32) -> (i32, i32) {
    %c0_i32 = arith.constant 0 : i32
    %c0_i32_0 = arith.constant 0 : i32
    %c0_i32_1 = arith.constant 0 : i32
    return %c0_i32, %c0_i32_0 : i32, i32
  }
  func.func @transform_6(%arg0: i32) -> (i32, i32) {
    %c0_i32 = arith.constant 0 : i32
    %c0_i32_0 = arith.constant 0 : i32
    %c0_i32_1 = arith.constant 0 : i32
    return %c0_i32, %c0_i32_0 : i32, i32
  }
  func.func @transform_7(%arg0: i32) -> (i32, i32) {
    %c0_i32 = arith.constant 0 : i32
    %c0_i32_0 = arith.constant 0 : i32
    %c0_i32_1 = arith.constant 0 : i32
    return %c0_i32, %c0_i32_0 : i32, i32
  }
  func.func @transform_8(%arg0: i32) -> (i32, i32) {
    %c0_i32 = arith.constant 0 : i32
    %c0_i32_0 = arith.constant 0 : i32
    %c0_i32_1 = arith.constant 0 : i32
    return %c0_i32, %c0_i32_0 : i32, i32
  }
  func.func @transform_9(%arg0: i32) -> (i32, i32) {
    %c0_i32 = arith.constant 0 : i32
    %c0_i32_0 = arith.constant 0 : i32
    %c0_i32_1 = arith.constant 0 : i32
    return %c0_i32, %c0_i32_0 : i32, i32
  }
  func.func @transform_10(%arg0: i32) -> (i32, i32) {
    %c0_i32 = arith.constant 0 : i32
    %c0_i32_0 = arith.constant 0 : i32
    %c0_i32_1 = arith.constant 0 : i32
    return %c0_i32, %c0_i32_0 : i32, i32
  }
  func.func @transform_11(%arg0: i32) -> (i32, i32) {
    %c0_i32 = arith.constant 0 : i32
    %c0_i32_0 = arith.constant 0 : i32
    return %arg0, %c0_i32 : i32, i32
  }
  func.func @transform_12(%arg0: i32) -> (i32, i32) {
    %c0_i32 = arith.constant 0 : i32
    %c0_i32_0 = arith.constant 0 : i32
    return %arg0, %c0_i32 : i32, i32
  }
}

</mosaic_0001>

<bundles_post_ra>
// kernel: tpu_custom_call.1
= control target key start
LH: loop header
LB: loop body
LE: loop exit
PB: predicated region body
PF: predicated region fallthrough
CT: control target
= control target key end

     0   :  { %18 = vsyncpa [#allocation3], 0  ;;  %s2613_s0 = inlined_call_operand.vmem [shape: f32[32,32], index: 0, kind: input, shape index: {}]   ;;  %s2614_s1 = inlined_call_operand.hbm [shape: f32[32,32], index: 1, kind: input, shape index: {}]   ;;  %s2615_s2 = inlined_call_operand.hbm [shape: f32[32,128], index: 2, kind: input, shape index: {}]   ;;  %s2616_s3 = inlined_call_operand.vmem [shape: f32[128,512], index: 3, kind: input, shape index: {}]   ;;  %s2617_s4 = inlined_call_operand.vmem [shape: f32[1,512], index: 4, kind: input, shape index: {}]   ;;  %s2618_s5 = inlined_call_operand.vmem [shape: f32[128,32], index: 5, kind: input, shape index: {}]   ;;  %s2619_s6 = inlined_call_operand.hbm [shape: f32[8,32], index: 6, kind: input, shape index: {}]   ;;  %s2620_s7 = inlined_call_operand.vmem [shape: f32[256,64], index: 7, kind: input, shape index: {}]   ;;  %s2621_s8 = inlined_call_operand.hbm [shape: f32[64,64], index: 8, kind: input, shape index: {}]   ;;  %s2622_s9 = inlined_call_operand.vmem [shape: f32[64,256], index: 9, kind: input, shape index: {}]   ;;  %s2623_s10 = inlined_call_operand.vmem [shape: f32[256,32], index: 10, kind: input, shape index: {}]   ;;  %s2624_s11 = inlined_call_operand.hbm [shape: f32[32,32], index: 11, kind: output, shape index: {0}]   ;;  %s2625_s12 = inlined_call_operand.hbm [shape: f32[32,512], index: 12, kind: output, shape index: {1}]  }
   0x1   :  { %19 = vsyncpa [#allocation6], 0 }
   0x2   :  { %20 = vsyncpa [#allocation9], 0 }
   0x3   :  { %21 = vsyncpa [#allocation4], 0 }
   0x4   :  { %22 = vsyncpa [#allocation12], 0  ;;  %s42_s23 = sshll.u32 %s2615_s2, 4  ;;  %s1628_s24 = smov [#allocation5]   ;;  %s43_s23 = int_to_ptr.hbm [resolvable:$true] %s42_s23 }
   0x5   :  { %s44_s25 = sshll.u32 %s1628_s24, 4  ;;  %s29_s28 = sshll.u32 %s2614_s1, 4  ;;  %s45_s25 = int_to_ptr.vmem [resolvable:$true] %s44_s25  ;;  %s30_s28 = int_to_ptr.hbm [resolvable:$true] %s29_s28 }
   0x6   :  { %s1629_s29 = smov 128   ;;  %s1630_s30 = smov 8  }
   0x7   :  { %50 = dma.hbm_to_vmem [thread:$0]  %s43_s23, 512, %s45_s25, [#allocation6], %s1629_s29, %s1629_s29, %s1630_s30  }
   0x8   :  { %s1631_s13 = smov [#allocation2]   ;;  %s62_s2 = sshll.u32 %s2619_s6, 4  ;;  %s63_s2 = int_to_ptr.hbm [resolvable:$true] %s62_s2 }
   0x9   :  { %s31_s14 = sshll.u32 %s1631_s13, 4  ;;  %s74_s18 = sshll.u32 %s2621_s8, 4  ;;  %s32_s14 = int_to_ptr.vmem [resolvable:$true] %s31_s14  ;;  %s75_s18 = int_to_ptr.hbm [resolvable:$true] %s74_s18 }
   0xa   :  { %37 = dma.hbm_to_vmem [thread:$0]  %s30_s28, 512, %s32_s14, [#allocation3], %s1629_s29, %s1629_s29, %s1630_s30  }
   0xb   :  { %s1632_s19 = smov [#allocation7]   ;;  %s1633_s21 = smov [#allocation8]  }
   0xc   :  { %s64_s20 = sshll.u32 %s1632_s19, 4  ;;  %s76_s22 = sshll.u32 %s1633_s21, 4  ;;  %s65_s20 = int_to_ptr.vmem [resolvable:$true] %s64_s20  ;;  %s77_s22 = int_to_ptr.vmem [resolvable:$true] %s76_s22 }
   0xd   :  { %67 = dma.hbm_to_vmem [thread:$0]  %s63_s2, 128, %s65_s20, [#allocation6]  }
   0xe   :  { %82 = dma.hbm_to_vmem [thread:$0]  %s75_s18, 1024, %s77_s22, [#allocation9], %s1629_s29, %s1629_s29, %s1630_s30  }
   0xf   :  { %1618 = dma.done.wait [#allocation3], 512  }
  0x10   :  { %1619 = vsyncadd [#allocation3], 4294966784 }
  0x11   :  { %1620 = dma.done.wait [#allocation6], 640  }
  0x12   :  { %1621 = vsyncadd [#allocation6], 4294966656 }
  0x13   :  { %1622 = dma.done.wait [#allocation9], 1024  }
  0x14   :  { %1623 = vsyncadd [#allocation9], 4294966272  ;;  %vm334_vm0 = vcmask 261120   ;;  %v1730_v0 = vld [vmem:[%s2613_s0 + $0x10] sm:$0xff]  ;;  %v1735_v1 = vld [vmem:[%s2613_s0] sm:$0xff]  ;;  %v1634_v8 = vmov 32.0  }
  0x15   :  { %v341_v2 = vsel %vm334_vm0, %v1730_v0, 0.0  ;;  %v335_v3 = vsel %vm334_vm0, %v1735_v1, 0.0  ;;  %v1744_v4 = vld [vmem:[%s2613_s0 + $0x18] sm:$0xff]  ;;  %v1749_v5 = vld [vmem:[%s2613_s0 + $0x8] sm:$0xff]  ;;  %1419 = vrcp.f32 %v1634_v8  ;;  %v167_v11 = vld [vmem:[%s2616_s3 + $0x1e0] sm:$0xff]  ;;  %s1635_s1 = smov 96  }
  0x16   :  { %342 = vadd.xlane.f32.xlu1 %v341_v2  ;;  %336 = vadd.xlane.f32.xlu0 %v335_v3  ;;  %v344_v6 = vsel %vm334_vm0, %v1744_v4, 0.0  ;;  %v338_v7 = vsel %vm334_vm0, %v1749_v5, 0.0  ;;  %v170_v12 = vld [vmem:[%s2616_s3 + $0x1f8] sm:$0xff]  ;;  %v163_v13 = vld [vmem:[%s2616_s3 + $0x1c0] sm:$0xff]  ;;  %v315_v8 = vld [vmem:[%s2618_s5 + $0x10] sm:$0xff]  ;;  %s1637_s17 = smov 32  }
  0x17   :  { %181 = vmatpush.msra.mxu0 %v167_v11  ;;  %268 = vmatpush.msra.mxu3 %v170_v12  ;;  %v166_v14 = vld [vmem:[%s2616_s3 + $0x1d8] sm:$0xff]  ;;  %v159_v16 = vld [vmem:[%s2616_s3 + $0x1a0] sm:$0xff]  ;;  %vm534_vm14 = vcmask 523264   ;;  %vm539_vm15 = vcmask 785408   ;;  %s1342_s8 = sshll.u32 %s2625_s12, 4  ;;  %s1639_s23 = smov 512   ;;  %s1343_s8 = int_to_ptr.hbm [resolvable:$true] %s1342_s8 }
  0x18   :  { %v162_v17 = vld [vmem:[%s2616_s3 + $0x1b8] sm:$0xff]  ;;  %v155_v18 = vld [vmem:[%s2616_s3 + $0x180] sm:$0xff]  ;;  %s1640_s12 = smov [#allocation10]   ;;  %s1329_s26 = sshll.u32 %s2624_s11, 4  ;;  %s1330_s26 = int_to_ptr.hbm [resolvable:$true] %s1329_s26 }
  0x19   :  { %182 = vmatpush.msra.mxu0 %v163_v13  ;;  %269 = vmatpush.msra.mxu3 %v166_v14  ;;  %v158_v19 = vld [vmem:[%s2616_s3 + $0x198] sm:$0xff]  ;;  %v151_v21 = vld [vmem:[%s2616_s3 + $0x160] sm:$0xff] }
  0x1a   :  { %v154_v22 = vld [vmem:[%s2616_s3 + $0x178] sm:$0xff]  ;;  %v147_v23 = vld [vmem:[%s2616_s3 + $0x140] sm:$0xff] }
  0x1b   :  { %v1420_v9 = vpop.eup %1419  ;;  %183 = vmatpush.msra.mxu0 %v159_v16  ;;  %270 = vmatpush.msra.mxu3 %v162_v17  ;;  %v150_v24 = vld [vmem:[%s2616_s3 + $0x158] sm:$0xff]  ;;  %v143_v26 = vld [vmem:[%s2616_s3 + $0x120] sm:$0xff] }
  0x1c   :  { %v348_v10 = vmul.f32 32.0, %v1420_v9  ;;  %v146_v27 = vld [vmem:[%s2616_s3 + $0x138] sm:$0xff]  ;;  %vm352_vm1 = vweird.f32 %v1420_v9  ;;  %v139_v28 = vld [vmem:[%s2616_s3 + $0x100] sm:$0xff] }
  0x1d   :  { %184 = vmatpush.msra.mxu0 %v155_v18  ;;  %271 = vmatpush.msra.mxu3 %v158_v19  ;;  %v142_v29 = vld [vmem:[%s2616_s3 + $0x118] sm:$0xff]  ;;  %v135_v31 = vld [vmem:[%s2616_s3 + $0xe0] sm:$0xff]  ;;  %v168_v19 = vld [vmem:[%s2616_s3 + $0x1e8] sm:$0xff] }
  0x1e   :  { %345 = vadd.xlane.f32.xlu1 %v344_v6  ;;  %339 = vadd.xlane.f32.xlu0 %v338_v7  ;;  %v349_v15 = vsub.f32 1.0, %v348_v10  ;;  %v138_v32 = vld [vmem:[%s2616_s3 + $0xf8] sm:$0xff]  ;;  %v131_v35 = vld [vmem:[%s2616_s3 + $0xc0] sm:$0xff]  ;;  %v1892_v6 = vld [vmem:[#allocation5 + $0x10] sm:$0xff] }
  0x1f   :  { %185 = vmatpush.msra.mxu0 %v151_v21  ;;  %272 = vmatpush.msra.mxu3 %v154_v22  ;;  %v134_v36 = vld [vmem:[%s2616_s3 + $0xd8] sm:$0xff]  ;;  %v127_v39 = vld [vmem:[%s2616_s3 + $0xa0] sm:$0xff] }
  0x20   :  { %v350_v20 = vmul.f32 %v1420_v9, %v349_v15  ;;  %v130_v40 = vld [vmem:[%s2616_s3 + $0xb8] sm:$0xff]  ;;  %v123_v43 = vld [vmem:[%s2616_s3 + $0x80] sm:$0xff]  ;;  %210 = vmatpush.msra.mxu1 %v168_v19 }
  0x21   :  { %186 = vmatpush.msra.mxu0 %v147_v23  ;;  %273 = vmatpush.msra.mxu3 %v150_v24  ;;  %v126_v44 = vld [vmem:[%s2616_s3 + $0x98] sm:$0xff]  ;;  %v119_v47 = vld [vmem:[%s2616_s3 + $0x60] sm:$0xff]  ;;  %v160_v23 = vld [vmem:[%s2616_s3 + $0x1a8] sm:$0xff] }
  0x22   :  { %v351_v25 = vadd.f32 %v1420_v9, %v350_v20  ;;  %v122_v48 = vld [vmem:[%s2616_s3 + $0x78] sm:$0xff]  ;;  %v115_v53 = vld [vmem:[%s2616_s3 + $0x40] sm:$0xff]  ;;  %v164_v20 = vld [vmem:[%s2616_s3 + $0x1c8] sm:$0xff] }
  0x23   :  { %187 = vmatpush.msra.mxu0 %v143_v26  ;;  %274 = vmatpush.msra.mxu3 %v146_v27  ;;  %v118_v54 = vld [vmem:[%s2616_s3 + $0x58] sm:$0xff]  ;;  %v111_v57 = vld [vmem:[%s2616_s3 + $0x20] sm:$0xff] }
  0x24   :  { %v1803_v30 = vsel %vm352_vm1, %v1420_v9, %v351_v25  ;;  %v114_v58 = vld [vmem:[%s2616_s3 + $0x38] sm:$0xff]  ;;  %v107_v61 = vld [vmem:[%s2616_s3] sm:$0xff]  ;;  %v314_v9 = vld [vmem:[%s2618_s5 + $0x8] sm:$0xff]  ;;  %211 = vmatpush.msra.mxu1 %v164_v20 }
  0x25   :  { %188 = vmatpush.msra.mxu0 %v139_v28  ;;  %275 = vmatpush.msra.mxu3 %v142_v29  ;;  %v110_v62 = vld [vmem:[%s2616_s3 + $0x18] sm:$0xff]  ;;  %v313_v10 = vld [vmem:[%s2618_s5] sm:$0xff]  ;;  %v156_v29 = vld [vmem:[%s2616_s3 + $0x188] sm:$0xff] }
  0x26   :  { %v1896_v7 = vld [vmem:[#allocation5 + $0x18] sm:$0xff]  ;;  %212 = vmatpush.msra.mxu1 %v160_v23 }
  0x27   :  { %189 = vmatpush.msra.mxu0 %v135_v31  ;;  %276 = vmatpush.msra.mxu3 %v138_v32  ;;  %v1933_v32 = vld [vmem:[%s2617_s4] sm:$0xf]  ;;  %s1636_s4 = smov 64  }
  0x28   :  { %213 = vmatpush.msra.mxu1 %v156_v29 }
  0x29   :  { %190 = vmatpush.msra.mxu0 %v131_v35  ;;  %277 = vmatpush.msra.mxu3 %v134_v36 }
  0x2b   :  { %191 = vmatpush.msra.mxu0 %v127_v39  ;;  %278 = vmatpush.msra.mxu3 %v130_v40 }
  0x2d   :  { %192 = vmatpush.msra.mxu0 %v123_v43  ;;  %279 = vmatpush.msra.mxu3 %v126_v44  ;;  %v1945_v43 = vld [vmem:[#allocation7] sm:$0xff]  ;;  %v144_v44 = vld [vmem:[%s2616_s3 + $0x128] sm:$0xff] }
  0x2f   :  { %193 = vmatpush.msra.mxu0 %v119_v47  ;;  %280 = vmatpush.msra.mxu3 %v122_v48 }
  0x31   :  { %194 = vmatpush.msra.mxu0 %v115_v53  ;;  %281 = vmatpush.msra.mxu3 %v118_v54 }
  0x33   :  { %195 = vmatpush.msra.mxu0 %v111_v57  ;;  %282 = vmatpush.msra.mxu3 %v114_v58  ;;  %v1964_v58 = vperm.slane %v1933_v32, 3 }
  0x35   :  { %196 = vmatpush.msra.mxu0 %v107_v61  ;;  %283 = vmatpush.msra.mxu3 %v110_v62 }
  0x89   :  { %v343_v33 = vpop.xlane.xlu1 %342  ;;  %v337_v34 = vpop.xlane.xlu0 %336 }
  0x8a   :  { %v356_v37 = vmul.f32 %v1803_v30, %v343_v33  ;;  %v354_v38 = vmul.f32 %v1803_v30, %v337_v34  ;;  %v152_v34 = vld [vmem:[%s2616_s3 + $0x168] sm:$0xff] }
  0x8b   :  { %214 = vmatpush.msra.mxu1 %v152_v34  ;;  %v128_v34 = vld [vmem:[%s2616_s3 + $0xa8] sm:$0xff] }
  0x8c   :  { %v1826_v41 = vsub.f32 %v1730_v0, %v356_v37  ;;  %v1829_v42 = vsub.f32 %v1735_v1, %v354_v38  ;;  %v1879_v1 = vld [vmem:[#allocation5] sm:$0xff]  ;;  %v1940_v37 = vperm.slane %v1933_v32, 0  ;;  %v148_v38 = vld [vmem:[%s2616_s3 + $0x148] sm:$0xff] }
  0x8d   :  { %197 = vmatmul.f32.vlgmr.msra.gmra.mxu0 %v1879_v1  ;;  %284 = vmatmul.f32.vlgmr.msra.gmra.mxu3 %v1879_v1 }
  0x8e   :  { %v364_v45 = vmul.f32 %v1826_v41, %v1826_v41  ;;  %v362_v46 = vmul.f32 %v1829_v42, %v1829_v42  ;;  %215 = vmatpush.msra.mxu1 %v148_v38  ;;  %v116_v38 = vld [vmem:[%s2616_s3 + $0x48] sm:$0xff] }
  0x90   :  { %v372_v49 = vsel %vm334_vm0, %v364_v45, 0.0  ;;  %v366_v50 = vsel %vm334_vm0, %v362_v46, 0.0  ;;  %216 = vmatpush.msra.mxu1 %v144_v44 }
  0x91   :  { %v346_v51 = vpop.xlane.xlu1 %345  ;;  %373 = vadd.xlane.f32.xlu0 %v372_v49  ;;  %367 = vadd.xlane.f32.xlu2 %v366_v50  ;;  %v340_v52 = vpop.xlane.xlu0 %339 }
  0x92   :  { %v357_v55 = vmul.f32 %v1803_v30, %v346_v51  ;;  %v355_v56 = vmul.f32 %v1803_v30, %v340_v52  ;;  %v140_v52 = vld [vmem:[%s2616_s3 + $0x108] sm:$0xff] }
  0x93   :  { %217 = vmatpush.msra.mxu1 %v140_v52 }
  0x94   :  { %v1864_v59 = vsub.f32 %v1744_v4, %v357_v55  ;;  %v1867_v60 = vsub.f32 %v1749_v5, %v355_v56  ;;  %v316_v4 = vld [vmem:[%s2618_s5 + $0x18] sm:$0xff]  ;;  %v1888_v5 = vld [vmem:[#allocation5 + $0x8] sm:$0xff]  ;;  %v430_v55 = vperm.slane %v1945_v43, 4 }
  0x95   :  { %473 = vmatpush.msrb.mxu0 %v316_v4  ;;  %1390 = vmatpush.msrb.mxu3 %v316_v4 }
  0x96   :  { %v365_v63 = vmul.f32 %v1864_v59, %v1864_v59  ;;  %v363_v0 = vmul.f32 %v1867_v60, %v1867_v60  ;;  %200 = vmatmul.f32.gmra.mxu0 %v1888_v5  ;;  %287 = vmatmul.f32.gmra.mxu3 %v1888_v5 }
  0x97   :  { %474 = vmatpush.msrb.mxu0 %v315_v8  ;;  %1391 = vmatpush.msrb.mxu3 %v315_v8 }
  0x98   :  { %v375_v2 = vsel %vm334_vm0, %v365_v63, 0.0  ;;  %v369_v3 = vsel %vm334_vm0, %v363_v0, 0.0  ;;  %v435_v0 = vperm.slane %v1945_v43, 5 }
  0x99   :  { %376 = vadd.xlane.f32.xlu1 %v375_v2  ;;  %370 = vadd.xlane.f32.xlu2 %v369_v3 }
  0x9a   :  { %475 = vmatpush.msrb.mxu0 %v314_v9  ;;  %1392 = vmatpush.msrb.mxu3 %v314_v9 }
  0x9c   :  { %476 = vmatpush.msrb.mxu0 %v313_v10  ;;  %1393 = vmatpush.msrb.mxu3 %v313_v10 }
  0x9e   :  { %203 = vmatmul.f32.gmra.mxu0 %v1892_v6  ;;  %290 = vmatmul.f32.gmra.mxu3 %v1892_v6 }
  0xa6   :  { %206 = vmatmul.f32.gmra.mxu0 %v1896_v7  ;;  %293 = vmatmul.f32.gmra.mxu3 %v1896_v7 }
 0x104   :  { %v368_v11 = vpop.xlane.xlu2 %367  ;;  %v374_v12 = vpop.xlane.xlu0 %373 }
 0x105   :  { %v378_v13 = vmul.f32 %v368_v11, %v1803_v30  ;;  %v380_v14 = vmul.f32 %v374_v12, %v1803_v30  ;;  %v440_v11 = vld [vmem:[#allocation2] sm:$0xff] }
 0x107   :  { %v382_v15 = vadd.f32 1e-05, %v378_v13  ;;  %v384_v16 = vadd.f32 1e-05, %v380_v14 }
 0x109   :  { %1421 = vrsqrt.f32 %v382_v15  ;;  %vm412_vm3 = vweird.f32 %v384_v16  ;;  %vm392_vm5 = vweird.f32 %v382_v15 }
 0x10a   :  { %1423 = vrsqrt.f32 %v384_v16  ;;  %v198_v47 = vpop.f32.mrf.mxu0 }
 0x10b   :  { %v1952_v51 = vadd.f32 %v198_v47, %v1940_v37 }
 0x10c   :  { %v377_v17 = vpop.xlane.xlu1 %376  ;;  %v371_v18 = vpop.xlane.xlu2 %370 }
 0x10d   :  { %v381_v21 = vmul.f32 %v377_v17, %v1803_v30  ;;  %v379_v22 = vmul.f32 %v371_v18, %v1803_v30  ;;  %297 = vst [vmem:[#allocation11] sm:$0xff] %v1952_v51 }
 0x10f   :  { %v1422_v24 = vpop.eup %1421  ;;  %v1922_v25 = vadd.f32 1e-05, %v381_v21  ;;  %v1924_v26 = vadd.f32 1e-05, %v379_v22 }
 0x110   :  { %v1424_v27 = vpop.eup %1423  ;;  %v387_v28 = vmul.f32 %v1422_v24, %v382_v15  ;;  %vm393_vm2 = vweird.f32 %v1422_v24  ;;  %v285_v9 = vpop.f32.mrf.mxu3  ;;  %v442_v15 = vld [vmem:[#allocation2 + $0x10] sm:$0xff] }
 0x111   :  { %v407_v31 = vmul.f32 %v1424_v27, %v384_v16  ;;  %1425 = vrsqrt.f32 %v1922_v25  ;;  %vm413_vm4 = vweird.f32 %v1424_v27  ;;  %vm394_vm6 = vmor %vm392_vm5, %vm393_vm2  ;;  %vm422_vm8 = vweird.f32 %v1922_v25 }
 0x112   :  { %v388_v33 = vmul.f32 %v1422_v24, %v387_v28  ;;  %1427 = vrsqrt.f32 %v1924_v26  ;;  %vm414_vm7 = vmor %vm412_vm3, %vm413_vm4  ;;  %v1971_v13 = vadd.f32 %v285_v9, %v1964_v58  ;;  %vm402_vm12 = vweird.f32 %v1924_v26  ;;  %v441_v28 = vld [vmem:[#allocation2 + $0x8] sm:$0xff]  ;;  %v153_v9 = vld [vmem:[%s2616_s3 + $0x170] sm:$0xff] }
 0x113   :  { %v408_v35 = vmul.f32 %v1424_v27, %v407_v31  ;;  %v201_v44 = vpop.f32.mrf.mxu0 }
 0x114   :  { %v389_v36 = vmul.f32 0.5, %v388_v33  ;;  %300 = vst [vmem:[#allocation11 + $0x18] sm:$0xff] %v1971_v13 }
 0x115   :  { %v409_v39 = vmul.f32 0.5, %v408_v35  ;;  %v124_v35 = vld [vmem:[%s2616_s3 + $0x88] sm:$0xff] }
 0x116   :  { %v390_v40 = vsub.f32 1.5, %v389_v36  ;;  %v120_v36 = vld [vmem:[%s2616_s3 + $0x68] sm:$0xff] }
 0x117   :  { %v1426_v45 = vpop.eup %1425  ;;  %v410_v46 = vsub.f32 1.5, %v409_v39  ;;  %v112_v39 = vld [vmem:[%s2616_s3 + $0x28] sm:$0xff] }
 0x118   :  { %v1428_v48 = vpop.eup %1427  ;;  %v391_v49 = vmul.f32 %v1422_v24, %v390_v40  ;;  %v417_v50 = vmul.f32 %v1426_v45, %v1922_v25  ;;  %vm423_vm9 = vweird.f32 %v1426_v45  ;;  %v443_v25 = vld [vmem:[#allocation2 + $0x18] sm:$0xff]  ;;  %v108_v40 = vld [vmem:[%s2616_s3 + $0x8] sm:$0xff] }
 0x119   :  { %v411_v53 = vmul.f32 %v1424_v27, %v410_v46  ;;  %v397_v54 = vmul.f32 %v1428_v48, %v1924_v26  ;;  %vm403_vm10 = vweird.f32 %v1428_v48  ;;  %vm424_vm11 = vmor %vm422_vm8, %vm423_vm9  ;;  %v288_v46 = vpop.f32.mrf.mxu3 }
 0x11a   :  { %v395_v56 = vsel %vm394_vm6, %v1422_v24, %v391_v49  ;;  %v418_v57 = vmul.f32 %v1426_v45, %v417_v50  ;;  %vm404_vm13 = vmor %vm402_vm12, %vm403_vm10  ;;  %v2015_v47 = vadd.f32 %v288_v46, %v1964_v58  ;;  %v572_v46 = vld [vmem:[%s2620_s7 + $0xa0] sm:$0xff] }
 0x11b   :  { %v426_v61 = vmul.f32 %v395_v56, %v1829_v42  ;;  %v415_v62 = vsel %vm414_vm7, %v1424_v27, %v411_v53  ;;  %v398_v63 = vmul.f32 %v1428_v48, %v397_v54 }
 0x11c   :  { %v428_v2 = vmul.f32 %v415_v62, %v1826_v41  ;;  %v419_v3 = vmul.f32 0.5, %v418_v57  ;;  %304 = vst [vmem:[#allocation11 + $0x38] sm:$0xff] %v2015_v47  ;;  %v448_v57 = vperm.slane %v1945_v43, 0  ;;  %v165_v43 = vld [vmem:[%s2616_s3 + $0x1d0] sm:$0xff] }
 0x11d   :  { %v399_v4 = vmul.f32 0.5, %v398_v63  ;;  %v431_v8 = vmul.f32 %v430_v55, %v426_v61 }
 0x11e   :  { %v420_v10 = vsub.f32 1.5, %v419_v3  ;;  %v433_v12 = vmul.f32 %v430_v55, %v428_v2 }
 0x11f   :  { %v400_v42 = vsub.f32 1.5, %v399_v4  ;;  %v436_v14 = vadd.f32 %v435_v0, %v431_v8  ;;  %v567_v4 = vld [vmem:[%s2620_s7 + $0x78] sm:$0xff] }
 0x120   :  { %v421_v16 = vmul.f32 %v1426_v45, %v420_v10  ;;  %v438_v17 = vadd.f32 %v435_v0, %v433_v12  ;;  %v566_v10 = vld [vmem:[%s2620_s7 + $0x70] sm:$0xff] }
 0x121   :  { %v401_v41 = vmul.f32 %v1428_v48, %v400_v42  ;;  %v444_v18 = vadd.f32 %v440_v11, %v436_v14  ;;  %v291_v50 = vpop.f32.mrf.mxu3  ;;  %v149_v11 = vld [vmem:[%s2616_s3 + $0x150] sm:$0xff] }
 0x122   :  { %v425_v19 = vsel %vm424_vm11, %v1426_v45, %v421_v16  ;;  %v446_v20 = vadd.f32 %v442_v15, %v438_v17  ;;  %v2010_v45 = vadd.f32 %v201_v44, %v1940_v37  ;;  %v2024_v52 = vadd.f32 %v291_v50, %v1964_v58  ;;  %v145_v12 = vld [vmem:[%s2616_s3 + $0x130] sm:$0xff] }
 0x123   :  { %v429_v21 = vmul.f32 %v425_v19, %v1864_v59  ;;  %v405_v22 = vsel %vm404_vm13, %v1428_v48, %v401_v41  ;;  %1362 = vmatmul.msk.f32.vlgmr.msrb.gmra.mxu0 %vm334_vm0, %v444_v18  ;;  %v136_v59 = vld [vmem:[%s2616_s3 + $0xe8] sm:$0xff]  ;;  %v204_v48 = vpop.f32.mrf.mxu0  ;;  %v141_v14 = vld [vmem:[%s2616_s3 + $0x110] sm:$0xff] }
 0x124   :  { %v427_v23 = vmul.f32 %v405_v22, %v1867_v60  ;;  %1364 = vmatmul.msk.f32.vlgmr.msrb.gmra.mxu3 %vm334_vm0, %v446_v20  ;;  %v132_v60 = vld [vmem:[%s2616_s3 + $0xc8] sm:$0xff]  ;;  %218 = vmatpush.msra.mxu1 %v136_v59  ;;  %301 = vst [vmem:[#allocation11 + $0x20] sm:$0xff] %v2010_v45  ;;  %v2019_v49 = vadd.f32 %v204_v48, %v1940_v37  ;;  %v137_v16 = vld [vmem:[%s2616_s3 + $0xf0] sm:$0xff]  ;;  %v560_v59 = vld [vmem:[%s2620_s7 + $0x40] sm:$0xff] }
 0x125   :  { %v434_v24 = vmul.f32 %v430_v55, %v429_v21  ;;  %308 = vst [vmem:[#allocation11 + $0x58] sm:$0xff] %v2024_v52  ;;  %v133_v17 = vld [vmem:[%s2616_s3 + $0xd0] sm:$0xff]  ;;  %v556_v48 = vld [vmem:[%s2620_s7 + $0x20] sm:$0xff] }
 0x126   :  { %v432_v27 = vmul.f32 %v430_v55, %v427_v23  ;;  %219 = vmatpush.msra.mxu1 %v132_v60  ;;  %305 = vst [vmem:[#allocation11 + $0x40] sm:$0xff] %v2019_v49  ;;  %v129_v41 = vld [vmem:[%s2616_s3 + $0xb0] sm:$0xff]  ;;  %v583_v23 = vld [vmem:[%s2620_s7 + $0xf8] sm:$0xff] }
 0x127   :  { %v439_v29 = vadd.f32 %v435_v0, %v434_v24  ;;  %v125_v18 = vld [vmem:[%s2616_s3 + $0x90] sm:$0xff]  ;;  %v575_v60 = vld [vmem:[%s2620_s7 + $0xb8] sm:$0xff] }
 0x128   :  { %v437_v31 = vadd.f32 %v435_v0, %v432_v27  ;;  %220 = vmatpush.msra.mxu1 %v128_v34  ;;  %v157_v0 = vld [vmem:[%s2616_s3 + $0x190] sm:$0xff]  ;;  %v581_v27 = vld [vmem:[%s2620_s7 + $0xe8] sm:$0xff]  ;;  %v559_v34 = vld [vmem:[%s2620_s7 + $0x38] sm:$0xff] }
 0x129   :  { %v447_v26 = vadd.f32 %v443_v25, %v439_v29  ;;  %v294_v55 = vpop.f32.mrf.mxu3  ;;  %v121_v19 = vld [vmem:[%s2616_s3 + $0x70] sm:$0xff]  ;;  %v580_v25 = vld [vmem:[%s2620_s7 + $0xe0] sm:$0xff] }
 0x12a   :  { %v445_v33 = vadd.f32 %v441_v28, %v437_v31  ;;  %221 = vmatpush.msra.mxu1 %v124_v35  ;;  %v2032_v56 = vadd.f32 %v294_v55, %v1964_v58  ;;  %v161_v58 = vld [vmem:[%s2616_s3 + $0x1b0] sm:$0xff]  ;;  %v577_v31 = vld [vmem:[%s2620_s7 + $0xc8] sm:$0xff]  ;;  %v555_v55 = vld [vmem:[%s2620_s7 + $0x18] sm:$0xff] }
 0x12b   :  { %v207_v53 = vpop.f32.mrf.mxu0  ;;  %v117_v20 = vld [vmem:[%s2616_s3 + $0x50] sm:$0xff] }
 0x12c   :  { %1363 = vmatmul.msk.f32.gmra.mxu0 %vm334_vm0, %v445_v33  ;;  %1365 = vmatmul.msk.f32.gmra.mxu3 %vm334_vm0, %v447_v26  ;;  %v2028_v54 = vadd.f32 %v207_v53, %v1940_v37  ;;  %312 = vst [vmem:[#allocation11 + $0x78] sm:$0xff] %v2032_v56  ;;  %v169_v37 = vld [vmem:[%s2616_s3 + $0x1f0] sm:$0xff]  ;;  %v561_v26 = vld [vmem:[%s2620_s7 + $0x48] sm:$0xff]  ;;  %v576_v33 = vld [vmem:[%s2620_s7 + $0xc0] sm:$0xff] }
 0x12d   :  { %222 = vmatpush.msra.mxu1 %v120_v36  ;;  %239 = vmatpush.msra.mxu2 %v169_v37  ;;  %v113_v21 = vld [vmem:[%s2616_s3 + $0x30] sm:$0xff]  ;;  %v571_v53 = vld [vmem:[%s2620_s7 + $0x98] sm:$0xff]  ;;  %v569_v37 = vld [vmem:[%s2620_s7 + $0x88] sm:$0xff] }
 0x12e   :  { %309 = vst [vmem:[#allocation11 + $0x60] sm:$0xff] %v2028_v54  ;;  %v109_v22 = vld [vmem:[%s2616_s3 + $0x10] sm:$0xff] }
 0x12f   :  { %223 = vmatpush.msra.mxu1 %v116_v38  ;;  %240 = vmatpush.msra.mxu2 %v165_v43  ;;  %v582_v24 = vld [vmem:[%s2620_s7 + $0xf0] sm:$0xff]  ;;  %v573_v38 = vld [vmem:[%s2620_s7 + $0xa8] sm:$0xff] }
 0x130   :  { %v578_v28 = vld [vmem:[%s2620_s7 + $0xd0] sm:$0xff]  ;;  %v553_v43 = vld [vmem:[%s2620_s7 + $0x8] sm:$0xff] }
 0x131   :  { %224 = vmatpush.msra.mxu1 %v112_v39  ;;  %241 = vmatpush.msra.mxu2 %v161_v58  ;;  %v562_v29 = vld [vmem:[%s2620_s7 + $0x50] sm:$0xff]  ;;  %v557_v39 = vld [vmem:[%s2620_s7 + $0x28] sm:$0xff]  ;;  %v568_v58 = vld [vmem:[%s2620_s7 + $0x80] sm:$0xff] }
 0x132   :  { %v574_v35 = vld [vmem:[%s2620_s7 + $0xb0] sm:$0xff] }
 0x133   :  { %225 = vmatpush.msra.mxu1 %v108_v40  ;;  %242 = vmatpush.msra.mxu2 %v157_v0  ;;  %v558_v36 = vld [vmem:[%s2620_s7 + $0x30] sm:$0xff]  ;;  %v174_v40 = vperm.slane %v1933_v32, 1 }
 0x134   :  { %226 = vmatmul.f32.vlgmr.msra.gmra.mxu1 %v1879_v1 }
 0x135   :  { %584 = vmatpush.msrb.mxu1 %v567_v4  ;;  %243 = vmatpush.msra.mxu2 %v153_v9 }
 0x137   :  { %585 = vmatpush.msrb.mxu1 %v566_v10  ;;  %244 = vmatpush.msra.mxu2 %v149_v11 }
 0x139   :  { %245 = vmatpush.msra.mxu2 %v145_v12 }
 0x13b   :  { %246 = vmatpush.msra.mxu2 %v141_v14 }
 0x13c   :  { %229 = vmatmul.f32.gmra.mxu1 %v1888_v5 }
 0x13d   :  { %247 = vmatpush.msra.mxu2 %v137_v16 }
 0x13f   :  { %248 = vmatpush.msra.mxu2 %v133_v17 }
 0x141   :  { %249 = vmatpush.msra.mxu2 %v129_v41 }
 0x143   :  { %250 = vmatpush.msra.mxu2 %v125_v18 }
 0x144   :  { %232 = vmatmul.f32.gmra.mxu1 %v1892_v6 }
 0x145   :  { %251 = vmatpush.msra.mxu2 %v121_v19 }
 0x147   :  { %252 = vmatpush.msra.mxu2 %v117_v20 }
 0x149   :  { %253 = vmatpush.msra.mxu2 %v113_v21 }
 0x14b   :  { %254 = vmatpush.msra.mxu2 %v109_v22 }
 0x14c   :  { %235 = vmatmul.f32.gmra.mxu1 %v1896_v7  ;;  %255 = vmatmul.f32.vlgmr.msra.gmra.mxu2 %v1879_v1  ;;  %v565_v1 = vld [vmem:[%s2620_s7 + $0x68] sm:$0xff] }
 0x14d   :  { %613 = vmatpush.msrb.mxu2 %v583_v23  ;;  %586 = vmatpush.msrb.mxu1 %v565_v1 }
 0x14f   :  { %614 = vmatpush.msrb.mxu2 %v582_v24 }
 0x151   :  { %615 = vmatpush.msrb.mxu2 %v581_v27 }
 0x153   :  { %616 = vmatpush.msrb.mxu2 %v580_v25 }
 0x154   :  { %258 = vmatmul.f32.gmra.mxu2 %v1888_v5  ;;  %v564_v5 = vld [vmem:[%s2620_s7 + $0x60] sm:$0xff] }
 0x155   :  { %587 = vmatpush.msrb.mxu1 %v564_v5 }
 0x15c   :  { %261 = vmatmul.f32.gmra.mxu2 %v1892_v6  ;;  %v579_v6 = vld [vmem:[%s2620_s7 + $0xd8] sm:$0xff] }
 0x15d   :  { %617 = vmatpush.msrb.mxu2 %v579_v6 }
 0x15f   :  { %618 = vmatpush.msrb.mxu2 %v578_v28 }
 0x161   :  { %619 = vmatpush.msrb.mxu2 %v577_v31 }
 0x163   :  { %620 = vmatpush.msrb.mxu2 %v576_v33 }
 0x164   :  { %264 = vmatmul.f32.gmra.mxu2 %v1896_v7  ;;  %v563_v7 = vld [vmem:[%s2620_s7 + $0x58] sm:$0xff] }
 0x165   :  { %588 = vmatpush.msrb.mxu1 %v563_v7  ;;  %621 = vmatpush.msrb.mxu2 %v575_v60 }
 0x167   :  { %589 = vmatpush.msrb.mxu1 %v562_v29  ;;  %622 = vmatpush.msrb.mxu2 %v574_v35 }
 0x169   :  { %590 = vmatpush.msrb.mxu1 %v561_v26  ;;  %623 = vmatpush.msrb.mxu2 %v573_v38 }
 0x16b   :  { %591 = vmatpush.msrb.mxu1 %v560_v59  ;;  %624 = vmatpush.msrb.mxu2 %v572_v46  ;;  %v673_v46 = vld [vmem:[#allocation8 + $0x38] sm:$0xff] }
 0x16c   :  { %694 = vmatpush.msra.mxu3 %v673_v46 }
 0x16d   :  { %592 = vmatpush.msrb.mxu1 %v559_v34  ;;  %625 = vmatpush.msrb.mxu2 %v571_v53 }
 0x16f   :  { %593 = vmatpush.msrb.mxu1 %v558_v36 }
 0x171   :  { %594 = vmatpush.msrb.mxu1 %v557_v39 }
 0x173   :  { %595 = vmatpush.msrb.mxu1 %v556_v48  ;;  %v672_v48 = vld [vmem:[#allocation8 + $0x30] sm:$0xff] }
 0x174   :  { %695 = vmatpush.msra.mxu3 %v672_v48 }
 0x175   :  { %596 = vmatpush.msrb.mxu1 %v555_v55 }
 0x1a0   :  { %v478_v61 = vpop.f32.mrf.mxu0 }
 0x1a1   :  { %v2036_v62 = vadd.f32 %v478_v61, %v448_v57  ;;  %v554_v61 = vld [vmem:[%s2620_s7 + $0x10] sm:$0xff] }
 0x1a2   :  { %597 = vmatpush.msrb.mxu1 %v554_v61 }
 0x1a3   :  { %518 = vrot.lane.b32.xlu1 %v2036_v62, %s1635_s1  ;;  %506 = vrot.lane.b32.xlu0 %v2036_v62, %s1636_s4 }
 0x1a4   :  { %494 = vrot.lane.b32.xlu2 %v2036_v62, %s1637_s17  ;;  %598 = vmatpush.msrb.mxu1 %v553_v43 }
 0x1a7   :  { %v484_v63 = vpop.f32.mrf.mxu3 }
 0x1a8   :  { %v2056_v2 = vadd.f32 %v484_v63, %v448_v57  ;;  %v552_v63 = vld [vmem:[%s2620_s7] sm:$0xff] }
 0x1a9   :  { %v481_v3 = vpop.f32.mrf.mxu0  ;;  %599 = vmatpush.msrb.mxu1 %v552_v63 }
 0x1aa   :  { %v2061_v8 = vadd.f32 %v481_v3, %v448_v57 }
 0x1ab   :  { %498 = vrot.lane.b32.xlu1 %v2056_v2, %s1637_s17 }
 0x1ac   :  { %508 = vrot.lane.b32.xlu0 %v2061_v8, %s1636_s4  ;;  %496 = vrot.lane.b32.xlu2 %v2061_v8, %s1637_s17 }
 0x1af   :  { %v487_v42 = vpop.f32.mrf.mxu3 }
 0x1b0   :  { %v2084_v15 = vadd.f32 %v487_v42, %v448_v57  ;;  %v570_v57 = vld [vmem:[%s2620_s7 + $0x90] sm:$0xff] }
 0x1b1   :  { %v227_v44 = vpop.f32.mrf.mxu1  ;;  %626 = vmatpush.msrb.mxu2 %v570_v57 }
 0x1b2   :  { %v228_v50 = vadd.f32 %v227_v44, %v174_v40 }
 0x1b3   :  { %500 = vrot.lane.b32.xlu1 %v2084_v15, %s1637_s17  ;;  %627 = vmatpush.msrb.mxu2 %v569_v37 }
 0x1b4   :  { %510 = vrot.lane.b32.xlu0 %v2056_v2, %s1636_s4  ;;  %520 = vrot.lane.b32.xlu2 %v2061_v8, %s1635_s1  ;;  %298 = vst [vmem:[#allocation11 + $0x8] sm:$0xff] %v228_v50 }
 0x1b5   :  { %628 = vmatpush.msrb.mxu2 %v568_v58 }
 0x1b9   :  { %v230_v0 = vpop.f32.mrf.mxu1 }
 0x1ba   :  { %v231_v3 = vadd.f32 %v230_v0, %v174_v40 }
 0x1bc   :  { %512 = vrot.lane.b32.xlu0 %v2084_v15, %s1636_s4  ;;  %522 = vrot.lane.b32.xlu2 %v2056_v2, %s1635_s1  ;;  %302 = vst [vmem:[#allocation11 + $0x28] sm:$0xff] %v231_v3 }
 0x1c1   :  { %v233_v4 = vpop.f32.mrf.mxu1 }
 0x1c2   :  { %v234_v9 = vadd.f32 %v233_v4, %v174_v40 }
 0x1c4   :  { %524 = vrot.lane.b32.xlu2 %v2084_v15, %s1635_s1  ;;  %306 = vst [vmem:[#allocation11 + $0x48] sm:$0xff] %v234_v9 }
 0x1c9   :  { %v236_v11 = vpop.f32.mrf.mxu1 }
 0x1ca   :  { %v237_v12 = vadd.f32 %v236_v11, %v174_v40 }
 0x1cc   :  { %310 = vst [vmem:[#allocation11 + $0x68] sm:$0xff] %v237_v12 }
 0x1cf   :  { %v256_v35 = vpop.f32.mrf.mxu2 }
 0x1d7   :  { %v259_v38 = vpop.f32.mrf.mxu2 }
 0x1df   :  { %v262_v39 = vpop.f32.mrf.mxu2 }
 0x1fe   :  { %v495_v10 = vpop.permute.xlu2 %494 }
 0x1ff   :  { %v530_v14 = vsel %vm334_vm0, %v2036_v62, %v495_v10 }
 0x206   :  { %v497_v42 = vpop.permute.xlu2 %496 }
 0x207   :  { %v531_v22 = vsel %vm334_vm0, %v2061_v8, %v497_v42  ;;  %v670_v42 = vld [vmem:[#allocation8 + $0x20] sm:$0xff] }
 0x20e   :  { %v521_v21 = vpop.permute.xlu2 %520 }
 0x215   :  { %v519_v16 = vpop.permute.xlu1 %518  ;;  %v507_v17 = vpop.permute.xlu0 %506 }
 0x216   :  { %v535_v41 = vsel %vm534_vm14, %v530_v14, %v507_v17  ;;  %v523_v5 = vpop.permute.xlu2 %522  ;;  %v669_v14 = vld [vmem:[#allocation8 + $0x18] sm:$0xff]  ;;  %v667_v17 = vld [vmem:[#allocation8 + $0x8] sm:$0xff] }
 0x217   :  { %v540_v18 = vsel %vm539_vm15, %v535_v41, %v519_v16  ;;  %v668_v16 = vld [vmem:[#allocation8 + $0x10] sm:$0xff]  ;;  %v666_v41 = vld [vmem:[#allocation8] sm:$0xff] }
 0x218   :  { %v544_v19 = vmul.f32 %v540_v18, %v1952_v51  ;;  %v545_v20 = vmul.f32 %v540_v18, %v228_v50  ;;  %v671_v50 = vld [vmem:[#allocation8 + $0x28] sm:$0xff] }
 0x219   :  { %696 = vmatpush.msra.mxu3 %v671_v50 }
 0x21a   :  { %600 = vmatmul.f32.vlgmr.msrb.gmra.mxu1 %v544_v19  ;;  %629 = vmatmul.f32.vlgmr.msrb.gmra.mxu2 %v545_v20 }
 0x21b   :  { %697 = vmatpush.msra.mxu3 %v670_v42  ;;  %v845_v42 = vld [vmem:[%s2623_s10 + $0x60] sm:$0xff] }
 0x21d   :  { %v499_v27 = vpop.permute.xlu1 %498  ;;  %698 = vmatpush.msra.mxu3 %v669_v14 }
 0x21e   :  { %v509_v23 = vpop.permute.xlu0 %508  ;;  %v532_v51 = vsel %vm334_vm0, %v2056_v2, %v499_v27  ;;  %v525_v33 = vpop.permute.xlu2 %524 }
 0x21f   :  { %v536_v24 = vsel %vm534_vm14, %v531_v22, %v509_v23  ;;  %699 = vmatpush.msra.mxu3 %v668_v16 }
 0x220   :  { %v541_v62 = vsel %vm539_vm15, %v536_v24, %v521_v21 }
 0x221   :  { %v546_v1 = vmul.f32 %v541_v62, %v2010_v45  ;;  %v547_v25 = vmul.f32 %v541_v62, %v231_v3  ;;  %700 = vmatpush.msra.mxu3 %v667_v17  ;;  %v844_v17 = vld [vmem:[%s2623_s10 + $0x58] sm:$0xff] }
 0x223   :  { %603 = vmatmul.f32.gmra.mxu1 %v546_v1  ;;  %632 = vmatmul.f32.gmra.mxu2 %v547_v25 }
 0x224   :  { %701 = vmatpush.msra.mxu3 %v666_v41 }
 0x225   :  { %v501_v31 = vpop.permute.xlu1 %500 }
 0x226   :  { %v511_v6 = vpop.permute.xlu0 %510  ;;  %v533_v45 = vsel %vm334_vm0, %v2084_v15, %v501_v31  ;;  %v749_v31 = vld [vmem:[%s2622_s9 + $0x50] sm:$0xff] }
 0x227   :  { %v537_v7 = vsel %vm534_vm14, %v532_v51, %v511_v6 }
 0x228   :  { %v542_v8 = vsel %vm539_vm15, %v537_v7, %v523_v5 }
 0x229   :  { %v548_v28 = vmul.f32 %v542_v8, %v2019_v49  ;;  %v549_v29 = vmul.f32 %v542_v8, %v234_v9  ;;  %v175_v49 = vperm.slane %v1933_v32, 2 }
 0x22b   :  { %606 = vmatmul.f32.gmra.mxu1 %v548_v28  ;;  %635 = vmatmul.f32.gmra.mxu2 %v549_v29  ;;  %v2238_v36 = vadd.f32 %v256_v35, %v175_v49  ;;  %v2241_v15 = vadd.f32 %v259_v38, %v175_v49  ;;  %v2244_v40 = vadd.f32 %v262_v39, %v175_v49  ;;  %v753_v28 = vld [vmem:[%s2622_s9 + $0x70] sm:$0xff]  ;;  %v751_v29 = vld [vmem:[%s2622_s9 + $0x60] sm:$0xff]  ;;  %v748_v35 = vld [vmem:[%s2622_s9 + $0x48] sm:$0xff] }
 0x22c   :  { %775 = vmatpush.msra.mxu0 %v753_v28  ;;  %v746_v38 = vld [vmem:[%s2622_s9 + $0x38] sm:$0xff]  ;;  %v744_v39 = vld [vmem:[%s2622_s9 + $0x28] sm:$0xff]  ;;  %v837_v28 = vld [vmem:[%s2623_s10 + $0x20] sm:$0xff] }
 0x22d   :  { %299 = vst [vmem:[#allocation11 + $0x10] sm:$0xff] %v2238_v36 }
 0x22e   :  { %v513_v26 = vpop.permute.xlu0 %512  ;;  %303 = vst [vmem:[#allocation11 + $0x30] sm:$0xff] %v2241_v15  ;;  %776 = vmatpush.msra.mxu0 %v751_v29 }
 0x22f   :  { %v538_v59 = vsel %vm534_vm14, %v533_v45, %v513_v26  ;;  %307 = vst [vmem:[#allocation11 + $0x50] sm:$0xff] %v2244_v40  ;;  %v747_v45 = vld [vmem:[%s2622_s9 + $0x40] sm:$0xff]  ;;  %v745_v26 = vld [vmem:[%s2622_s9 + $0x30] sm:$0xff] }
 0x230   :  { %v543_v2 = vsel %vm539_vm15, %v538_v59, %v525_v33  ;;  %777 = vmatpush.msra.mxu0 %v749_v31  ;;  %v754_v33 = vld [vmem:[%s2622_s9 + $0x78] sm:$0xff]  ;;  %v743_v59 = vld [vmem:[%s2622_s9 + $0x20] sm:$0xff] }
 0x231   :  { %v550_v60 = vmul.f32 %v543_v2, %v2028_v54  ;;  %v551_v34 = vmul.f32 %v543_v2, %v237_v12  ;;  %v265_v54 = vpop.f32.mrf.mxu2  ;;  %1394 = vmatpush.msra.mxu1 %v754_v33  ;;  %v752_v2 = vld [vmem:[%s2622_s9 + $0x68] sm:$0xff]  ;;  %v836_v31 = vld [vmem:[%s2623_s10 + $0x18] sm:$0xff] }
 0x232   :  { %v2247_v44 = vadd.f32 %v265_v54, %v175_v49  ;;  %778 = vmatpush.msra.mxu0 %v747_v45  ;;  %v739_v49 = vld [vmem:[%s2622_s9] sm:$0xff]  ;;  %v742_v54 = vld [vmem:[%s2622_s9 + $0x18] sm:$0xff]  ;;  %v835_v45 = vld [vmem:[%s2623_s10 + $0x10] sm:$0xff] }
 0x233   :  { %609 = vmatmul.f32.gmra.mxu1 %v550_v60  ;;  %638 = vmatmul.f32.gmra.mxu2 %v551_v34  ;;  %v741_v60 = vld [vmem:[%s2622_s9 + $0x10] sm:$0xff]  ;;  %v750_v34 = vld [vmem:[%s2622_s9 + $0x58] sm:$0xff] }
 0x234   :  { %311 = vst [vmem:[#allocation11 + $0x70] sm:$0xff] %v2247_v44  ;;  %779 = vmatpush.msra.mxu0 %v745_v26  ;;  %1395 = vmatpush.msra.mxu1 %v752_v2  ;;  %v833_v26 = vld [vmem:[%s2623_s10] sm:$0xff] }
 0x236   :  { %780 = vmatpush.msra.mxu0 %v743_v59  ;;  %1396 = vmatpush.msra.mxu1 %v750_v34  ;;  %v863_v59 = vld [vmem:[%s2623_s10 + $0xf0] sm:$0xff] }
 0x238   :  { %781 = vmatpush.msra.mxu0 %v741_v60  ;;  %1397 = vmatpush.msra.mxu1 %v748_v35  ;;  %v861_v60 = vld [vmem:[%s2623_s10 + $0xe0] sm:$0xff] }
 0x23a   :  { %782 = vmatpush.msra.mxu0 %v739_v49  ;;  %1398 = vmatpush.msra.mxu1 %v746_v38  ;;  %v859_v49 = vld [vmem:[%s2623_s10 + $0xd0] sm:$0xff] }
 0x23c   :  { %804 = vmatpush.msrb.mxu0 %v754_v33  ;;  %1399 = vmatpush.msra.mxu1 %v744_v39  ;;  %v864_v33 = vld [vmem:[%s2623_s10 + $0xf8] sm:$0xff] }
 0x23d   :  { %894 = vmatpush.msrb.mxu3 %v864_v33 }
 0x23e   :  { %805 = vmatpush.msrb.mxu0 %v752_v2  ;;  %1400 = vmatpush.msra.mxu1 %v742_v54  ;;  %v862_v2 = vld [vmem:[%s2623_s10 + $0xe8] sm:$0xff] }
 0x23f   :  { %895 = vmatpush.msrb.mxu3 %v863_v59 }
 0x240   :  { %806 = vmatpush.msrb.mxu0 %v750_v34  ;;  %v860_v34 = vld [vmem:[%s2623_s10 + $0xd8] sm:$0xff] }
 0x241   :  { %896 = vmatpush.msrb.mxu3 %v862_v2 }
 0x242   :  { %807 = vmatpush.msrb.mxu0 %v748_v35  ;;  %v858_v35 = vld [vmem:[%s2623_s10 + $0xc8] sm:$0xff] }
 0x243   :  { %897 = vmatpush.msrb.mxu3 %v861_v60 }
 0x244   :  { %808 = vmatpush.msrb.mxu0 %v746_v38  ;;  %v857_v38 = vld [vmem:[%s2623_s10 + $0xc0] sm:$0xff] }
 0x245   :  { %898 = vmatpush.msrb.mxu3 %v860_v34  ;;  %v1473_v34 = vld [vmem:[%s2613_s0 + $0x18] sm:$0xff] }
 0x246   :  { %809 = vmatpush.msrb.mxu0 %v744_v39  ;;  %v856_v39 = vld [vmem:[%s2623_s10 + $0xb8] sm:$0xff] }
 0x247   :  { %899 = vmatpush.msrb.mxu3 %v859_v49 }
 0x248   :  { %810 = vmatpush.msrb.mxu0 %v742_v54  ;;  %v855_v54 = vld [vmem:[%s2623_s10 + $0xb0] sm:$0xff] }
 0x249   :  { %900 = vmatpush.msrb.mxu3 %v858_v35 }
 0x24b   :  { %901 = vmatpush.msrb.mxu3 %v857_v38 }
 0x24d   :  { %902 = vmatpush.msrb.mxu3 %v856_v39 }
 0x24f   :  { %903 = vmatpush.msrb.mxu3 %v855_v54 }
 0x297   :  { %v601_v32 = vpop.f32.mrf.mxu1 }
 0x29d   :  { %v630_v53 = vpop.f32.mrf.mxu2 }
 0x29e   :  { %v631_v55 = vadd.f32 %v630_v53, %v601_v32  ;;  %v740_v32 = vld [vmem:[%s2622_s9 + $0x8] sm:$0xff] }
 0x29f   :  { %1401 = vmatpush.msra.mxu1 %v740_v32  ;;  %811 = vmatpush.msrb.mxu0 %v740_v32  ;;  %v854_v32 = vld [vmem:[%s2623_s10 + $0xa8] sm:$0xff] }
 0x2a0   :  { %v642_v57 = vsel %vm534_vm14, %v631_v55, -inf  ;;  %v604_v61 = vpop.f32.mrf.mxu1  ;;  %904 = vmatpush.msrb.mxu3 %v854_v32 }
 0x2a1   :  { %643 = vmax.xlane.f32.xlu1 %v642_v57 }
 0x2a6   :  { %v633_v37 = vpop.f32.mrf.mxu2 }
 0x2a7   :  { %v634_v43 = vadd.f32 %v633_v37, %v604_v61 }
 0x2a8   :  { %v607_v63 = vpop.f32.mrf.mxu1 }
 0x2a9   :  { %v645_v58 = vsel %vm534_vm14, %v634_v43, -inf }
 0x2aa   :  { %646 = vmax.xlane.f32.xlu0 %v645_v58 }
 0x2ae   :  { %v636_v0 = vpop.f32.mrf.mxu2 }
 0x2af   :  { %v637_v3 = vadd.f32 %v636_v0, %v607_v63 }
 0x2b0   :  { %v610_v9 = vpop.f32.mrf.mxu1 }
 0x2b1   :  { %v648_v4 = vsel %vm534_vm14, %v637_v3, -inf }
 0x2b2   :  { %649 = vmax.xlane.f32.xlu2 %v648_v4  ;;  %v848_v4 = vld [vmem:[%s2623_s10 + $0x78] sm:$0xff] }
 0x2b3   :  { %865 = vmatpush.msra.mxu2 %v848_v4 }
 0x2b6   :  { %v639_v10 = vpop.f32.mrf.mxu2 }
 0x2b7   :  { %v640_v11 = vadd.f32 %v639_v10, %v610_v9  ;;  %v847_v9 = vld [vmem:[%s2623_s10 + $0x70] sm:$0xff] }
 0x2b8   :  { %866 = vmatpush.msra.mxu2 %v847_v9 }
 0x2b9   :  { %v651_v12 = vsel %vm534_vm14, %v640_v11, -inf }
 0x2ba   :  { %652 = vmax.xlane.f32.xlu1 %v651_v12 }
 0x314   :  { %v644_v18 = vpop.xlane.xlu1 %643 }
 0x315   :  { %v654_v19 = vsub.f32 %v631_v55, %v644_v18 }
 0x317   :  { %v658_v20 = vmul.f32 1.442695, %v654_v19 }
 0x319   :  { %1429 = vpow2.f32 %v658_v20  ;;  %v843_v20 = vld [vmem:[%s2623_s10 + $0x50] sm:$0xff] }
 0x31d   :  { %v647_v21 = vpop.xlane.xlu0 %646 }
 0x31e   :  { %v655_v22 = vsub.f32 %v634_v43, %v647_v21 }
 0x31f   :  { %v2254_v23 = vpop.eup %1429 }
 0x320   :  { %v660_v24 = vmul.f32 1.442695, %v655_v22  ;;  %1366 = vmatmul.msk.f32.vlgmr.msra.gmra.mxu3 %vm534_vm14, %v2254_v23  ;;  %v842_v22 = vld [vmem:[%s2623_s10 + $0x48] sm:$0xff] }
 0x322   :  { %1431 = vpow2.f32 %v660_v24  ;;  %v841_v24 = vld [vmem:[%s2623_s10 + $0x40] sm:$0xff] }
 0x325   :  { %v650_v62 = vpop.xlane.xlu2 %649 }
 0x326   :  { %v656_v27 = vsub.f32 %v637_v3, %v650_v62 }
 0x328   :  { %v2258_v1 = vpop.eup %1431  ;;  %v662_v25 = vmul.f32 1.442695, %v656_v27  ;;  %v840_v27 = vld [vmem:[%s2623_s10 + $0x38] sm:$0xff] }
 0x329   :  { %1367 = vmatmul.msk.f32.gmra.mxu3 %vm534_vm14, %v2258_v1 }
 0x32a   :  { %1433 = vpow2.f32 %v662_v25 }
 0x32d   :  { %v653_v5 = vpop.xlane.xlu1 %652 }
 0x32e   :  { %v657_v51 = vsub.f32 %v640_v11, %v653_v5  ;;  %v846_v11 = vld [vmem:[%s2623_s10 + $0x68] sm:$0xff]  ;;  %v839_v5 = vld [vmem:[%s2623_s10 + $0x30] sm:$0xff] }
 0x32f   :  { %867 = vmatpush.msra.mxu2 %v846_v11 }
 0x330   :  { %v2262_v6 = vpop.eup %1433  ;;  %v664_v7 = vmul.f32 1.442695, %v657_v51 }
 0x331   :  { %1368 = vmatmul.msk.f32.gmra.mxu3 %vm534_vm14, %v2262_v6  ;;  %868 = vmatpush.msra.mxu2 %v845_v42 }
 0x332   :  { %1435 = vpow2.f32 %v664_v7 }
 0x333   :  { %869 = vmatpush.msra.mxu2 %v844_v17 }
 0x335   :  { %870 = vmatpush.msra.mxu2 %v843_v20 }
 0x337   :  { %871 = vmatpush.msra.mxu2 %v842_v22 }
 0x338   :  { %v2266_v8 = vpop.eup %1435 }
 0x339   :  { %1369 = vmatmul.msk.f32.gmra.mxu3 %vm534_vm14, %v2266_v8  ;;  %872 = vmatpush.msra.mxu2 %v841_v24  ;;  %v2450_v24 = vld [vmem:[#allocation7] sm:$0xff] }
 0x33b   :  { %873 = vmatpush.msra.mxu2 %v840_v27 }
 0x33d   :  { %874 = vmatpush.msra.mxu2 %v839_v5 }
 0x3a3   :  { %v703_v46 = vpop.f32.mrf.mxu3 }
 0x3a4   :  { %v715_v48 = vmax.f32 %v703_v46, 1e-30  ;;  %v853_v46 = vld [vmem:[%s2623_s10 + $0xa0] sm:$0xff] }
 0x3a5   :  { %905 = vmatpush.msrb.mxu3 %v853_v46 }
 0x3a6   :  { %1437 = vrcp.f32 %v715_v48 }
 0x3ac   :  { %v1438_v50 = vpop.eup %1437  ;;  %v706_v53 = vpop.f32.mrf.mxu3 }
 0x3ad   :  { %v723_v55 = vmul.f32 %v1438_v50, %v715_v48  ;;  %v716_v57 = vmax.f32 %v706_v53, 1e-30  ;;  %v852_v48 = vld [vmem:[%s2623_s10 + $0x98] sm:$0xff]  ;;  %v850_v53 = vld [vmem:[%s2623_s10 + $0x88] sm:$0xff] }
 0x3ae   :  { %906 = vmatpush.msrb.mxu3 %v852_v48 }
 0x3af   :  { %v727_v61 = vsub.f32 2.0, %v723_v55  ;;  %1439 = vrcp.f32 %v716_v57 }
 0x3b1   :  { %v731_v37 = vmul.f32 %v1438_v50, %v727_v61  ;;  %v851_v50 = vld [vmem:[%s2623_s10 + $0x90] sm:$0xff]  ;;  %v849_v61 = vld [vmem:[%s2623_s10 + $0x80] sm:$0xff] }
 0x3b2   :  { %907 = vmatpush.msrb.mxu3 %v851_v50 }
 0x3b3   :  { %v735_v43 = vmul.f32 %v2254_v23, %v731_v37 }
 0x3b4   :  { %v709_v58 = vpop.f32.mrf.mxu3  ;;  %908 = vmatpush.msrb.mxu3 %v850_v53 }
 0x3b5   :  { %v1440_v63 = vpop.eup %1439  ;;  %v717_v0 = vmax.f32 %v709_v58, 1e-30  ;;  %1370 = vmatmul.msk.f32.vlgmr.msra.gmra.mxu0 %vm534_vm14, %v735_v43 }
 0x3b6   :  { %v724_v3 = vmul.f32 %v1440_v63, %v716_v57  ;;  %909 = vmatpush.msrb.mxu3 %v849_v61 }
 0x3b7   :  { %1441 = vrcp.f32 %v717_v0 }
 0x3b8   :  { %v728_v10 = vsub.f32 2.0, %v724_v3 }
 0x3ba   :  { %v732_v12 = vmul.f32 %v1440_v63, %v728_v10 }
 0x3bc   :  { %v712_v14 = vpop.f32.mrf.mxu3  ;;  %v736_v16 = vmul.f32 %v2258_v1, %v732_v12 }
 0x3bd   :  { %v1442_v41 = vpop.eup %1441  ;;  %v718_v18 = vmax.f32 %v712_v14, 1e-30 }
 0x3be   :  { %v725_v19 = vmul.f32 %v1442_v41, %v717_v0  ;;  %1371 = vmatmul.msk.f32.gmra.mxu0 %vm534_vm14, %v736_v16  ;;  %1375 = vmatmul.msk.f32.vlgmr.msra.gmra.mxu1 %vm534_vm14, %v736_v16 }
 0x3bf   :  { %1443 = vrcp.f32 %v718_v18 }
 0x3c0   :  { %v729_v21 = vsub.f32 2.0, %v725_v19 }
 0x3c2   :  { %v733_v23 = vmul.f32 %v1442_v41, %v729_v21 }
 0x3c4   :  { %v737_v62 = vmul.f32 %v2262_v6, %v733_v23  ;;  %v838_v6 = vld [vmem:[%s2623_s10 + $0x28] sm:$0xff] }
 0x3c5   :  { %v1444_v1 = vpop.eup %1443  ;;  %875 = vmatpush.msra.mxu2 %v838_v6 }
 0x3c6   :  { %v726_v25 = vmul.f32 %v1444_v1, %v718_v18  ;;  %1372 = vmatmul.msk.f32.gmra.mxu0 %vm534_vm14, %v737_v62  ;;  %1376 = vmatmul.msk.f32.gmra.mxu1 %vm534_vm14, %v737_v62  ;;  %v923_v62 = vperm.slane %v2450_v24, 1 }
 0x3c7   :  { %876 = vmatpush.msra.mxu2 %v837_v28  ;;  %v1471_v28 = vld [vmem:[%s2613_s0 + $0x8] sm:$0xff] }
 0x3c8   :  { %v730_v51 = vsub.f32 2.0, %v726_v25  ;;  %v1470_v25 = vld [vmem:[%s2613_s0] sm:$0xff] }
 0x3c9   :  { %877 = vmatpush.msra.mxu2 %v836_v31 }
 0x3ca   :  { %v734_v7 = vmul.f32 %v1444_v1, %v730_v51 }
 0x3cb   :  { %878 = vmatpush.msra.mxu2 %v835_v45 }
 0x3cc   :  { %v738_v29 = vmul.f32 %v2266_v8, %v734_v7  ;;  %v834_v8 = vld [vmem:[%s2623_s10 + $0x8] sm:$0xff] }
 0x3cd   :  { %879 = vmatpush.msra.mxu2 %v834_v8 }
 0x3ce   :  { %1373 = vmatmul.msk.f32.gmra.mxu0 %vm534_vm14, %v738_v29  ;;  %1377 = vmatmul.msk.f32.gmra.mxu1 %vm534_vm14, %v738_v29 }
 0x3cf   :  { %880 = vmatpush.msra.mxu2 %v833_v26  ;;  %v1472_v26 = vld [vmem:[%s2613_s0 + $0x10] sm:$0xff] }
 0x3d6   :  { %1374 = vmatmul.msk.f32.vlgmr.msrb.gmra.mxu0 %vm534_vm14, %v735_v43 }
 0x432   :  { %v784_v55 = vpop.f32.mrf.mxu0 }
 0x433   :  { %v825_v57 = vmul.f32 %v784_v55, %v2238_v36 }
 0x435   :  { %881 = vmatmul.f32.vlgmr.msra.gmra.mxu2 %v825_v57 }
 0x43b   :  { %v787_v37 = vpop.f32.mrf.mxu0  ;;  %v816_v9 = vpop.f32.mrf.mxu1 }
 0x43c   :  { %v827_v43 = vmul.f32 %v787_v37, %v2241_v15  ;;  %v828_v10 = vmul.f32 %v816_v9, %v2015_v47  ;;  %v318_v47 = vld [vmem:[%s2618_s5 + $0x28] sm:$0xff] }
 0x43e   :  { %884 = vmatmul.f32.gmra.mxu2 %v827_v43 }
 0x443   :  { %v790_v58 = vpop.f32.mrf.mxu0  ;;  %v819_v11 = vpop.f32.mrf.mxu1 }
 0x444   :  { %v829_v63 = vmul.f32 %v790_v58, %v2244_v40  ;;  %v830_v15 = vmul.f32 %v819_v11, %v2024_v52  ;;  %v317_v52 = vld [vmem:[%s2618_s5 + $0x20] sm:$0xff]  ;;  %v323_v11 = vld [vmem:[%s2618_s5 + $0x50] sm:$0xff] }
 0x446   :  { %887 = vmatmul.f32.gmra.mxu2 %v829_v63 }
 0x44b   :  { %v793_v0 = vpop.f32.mrf.mxu0  ;;  %v822_v12 = vpop.f32.mrf.mxu1 }
 0x44c   :  { %v831_v3 = vmul.f32 %v793_v0, %v2247_v44  ;;  %v832_v40 = vmul.f32 %v822_v12, %v2032_v56  ;;  %v320_v44 = vld [vmem:[%s2618_s5 + $0x38] sm:$0xff]  ;;  %v321_v12 = vld [vmem:[%s2618_s5 + $0x40] sm:$0xff] }
 0x44d   :  { %948 = vmatpush.msra.mxu0 %v320_v44 }
 0x44e   :  { %890 = vmatmul.f32.gmra.mxu2 %v831_v3 }
 0x453   :  { %v813_v36 = vpop.f32.mrf.mxu0 }
 0x454   :  { %v826_v4 = vmul.f32 %v813_v36, %v1971_v13  ;;  %v319_v13 = vld [vmem:[%s2618_s5 + $0x30] sm:$0xff] }
 0x455   :  { %949 = vmatpush.msra.mxu0 %v319_v13 }
 0x456   :  { %910 = vmatmul.f32.vlgmr.msrb.gmra.mxu3 %v826_v4 }
 0x457   :  { %950 = vmatpush.msra.mxu0 %v318_v47 }
 0x459   :  { %951 = vmatpush.msra.mxu0 %v317_v52 }
 0x45e   :  { %913 = vmatmul.f32.gmra.mxu3 %v828_v10  ;;  %v324_v10 = vld [vmem:[%s2618_s5 + $0x58] sm:$0xff] }
 0x45f   :  { %1092 = vmatpush.msrb.mxu1 %v324_v10 }
 0x461   :  { %1093 = vmatpush.msrb.mxu1 %v323_v11  ;;  %v1067_v11 = vperm.slane %v2450_v24, 2 }
 0x466   :  { %916 = vmatmul.f32.gmra.mxu3 %v830_v15  ;;  %v322_v15 = vld [vmem:[%s2618_s5 + $0x48] sm:$0xff] }
 0x467   :  { %1094 = vmatpush.msrb.mxu1 %v322_v15 }
 0x469   :  { %1095 = vmatpush.msrb.mxu1 %v321_v12 }
 0x46e   :  { %919 = vmatmul.f32.gmra.mxu3 %v832_v40 }
 0x4b8   :  { %v882_v56 = vpop.f32.mrf.mxu2 }
 0x4c1   :  { %v885_v16 = vpop.f32.mrf.mxu2 }
 0x4c9   :  { %v888_v18 = vpop.f32.mrf.mxu2 }
 0x4d1   :  { %v891_v21 = vpop.f32.mrf.mxu2 }
 0x4d9   :  { %v911_v42 = vpop.f32.mrf.mxu3 }
 0x4da   :  { %v912_v14 = vadd.f32 %v911_v42, %v882_v56 }
 0x4dc   :  { %1378 = vmatmul.msk.f32.vlgmr.msra.gmra.mxu0 %vm334_vm0, %v912_v14 }
 0x4e1   :  { %v914_v17 = vpop.f32.mrf.mxu3 }
 0x4e2   :  { %v915_v41 = vadd.f32 %v914_v17, %v885_v16 }
 0x4e4   :  { %1379 = vmatmul.msk.f32.gmra.mxu0 %vm334_vm0, %v915_v41 }
 0x4e9   :  { %v917_v19 = vpop.f32.mrf.mxu3 }
 0x4ea   :  { %v918_v20 = vadd.f32 %v917_v19, %v888_v18 }
 0x4ec   :  { %1380 = vmatmul.msk.f32.gmra.mxu0 %vm334_vm0, %v918_v20 }
 0x4f1   :  { %v920_v22 = vpop.f32.mrf.mxu3 }
 0x4f2   :  { %v921_v23 = vadd.f32 %v920_v22, %v891_v21 }
 0x4f4   :  { %1381 = vmatmul.msk.f32.gmra.mxu0 %vm334_vm0, %v921_v23 }
 0x559   :  { %v953_v27 = vpop.f32.mrf.mxu0 }
 0x55a   :  { %v954_v1 = vadd.f32 %v953_v27, %v923_v62 }
 0x55c   :  { %v2456_v5 = vadd.f32 %v1470_v25, %v954_v1 }
 0x55e   :  { %v969_v51 = vsel %vm334_vm0, %v2456_v5, 0.0 }
 0x55f   :  { %970 = vadd.xlane.f32.xlu0 %v969_v51  ;;  %v1062_v51 = vperm.slane %v2450_v24, 7 }
 0x561   :  { %v956_v6 = vpop.f32.mrf.mxu0 }
 0x562   :  { %v957_v7 = vadd.f32 %v956_v6, %v923_v62 }
 0x564   :  { %v2463_v29 = vadd.f32 %v1471_v28, %v957_v7 }
 0x566   :  { %v972_v31 = vsel %vm334_vm0, %v2463_v29, 0.0 }
 0x567   :  { %973 = vadd.xlane.f32.xlu2 %v972_v31 }
 0x569   :  { %v959_v45 = vpop.f32.mrf.mxu0 }
 0x56a   :  { %v960_v8 = vadd.f32 %v959_v45, %v923_v62 }
 0x56c   :  { %v2470_v33 = vadd.f32 %v1472_v26, %v960_v8 }
 0x56e   :  { %v975_v59 = vsel %vm334_vm0, %v2470_v33, 0.0 }
 0x56f   :  { %976 = vadd.xlane.f32.xlu1 %v975_v59 }
 0x571   :  { %v962_v2 = vpop.f32.mrf.mxu0 }
 0x572   :  { %v963_v60 = vadd.f32 %v962_v2, %v923_v62  ;;  %v1057_v62 = vperm.slane %v2450_v24, 6 }
 0x574   :  { %v2477_v49 = vadd.f32 %v1473_v34, %v963_v60 }
 0x576   :  { %v978_v35 = vsel %vm334_vm0, %v2477_v49, 0.0 }
 0x577   :  { %979 = vadd.xlane.f32.xlu0 %v978_v35 }
 0x5d2   :  { %v971_v38 = vpop.xlane.xlu0 %970 }
 0x5d3   :  { %v981_v39 = vmul.f32 %v971_v38, %v1803_v30 }
 0x5d5   :  { %v985_v54 = vsub.f32 %v2456_v5, %v981_v39 }
 0x5d7   :  { %v989_v32 = vmul.f32 %v985_v54, %v985_v54 }
 0x5d9   :  { %v993_v46 = vsel %vm334_vm0, %v989_v32, 0.0 }
 0x5da   :  { %v974_v48 = vpop.xlane.xlu2 %973  ;;  %994 = vadd.xlane.f32.xlu2 %v993_v46 }
 0x5db   :  { %v982_v50 = vmul.f32 %v974_v48, %v1803_v30 }
 0x5dd   :  { %v2486_v53 = vsub.f32 %v2463_v29, %v982_v50 }
 0x5df   :  { %v990_v55 = vmul.f32 %v2486_v53, %v2486_v53 }
 0x5e1   :  { %v996_v57 = vsel %vm334_vm0, %v990_v55, 0.0 }
 0x5e2   :  { %v977_v61 = vpop.xlane.xlu1 %976  ;;  %997 = vadd.xlane.f32.xlu1 %v996_v57 }
 0x5e3   :  { %v983_v37 = vmul.f32 %v977_v61, %v1803_v30 }
 0x5e5   :  { %v2493_v43 = vsub.f32 %v2470_v33, %v983_v37 }
 0x5e7   :  { %v991_v58 = vmul.f32 %v2493_v43, %v2493_v43 }
 0x5e9   :  { %v999_v63 = vsel %vm334_vm0, %v991_v58, 0.0 }
 0x5ea   :  { %1000 = vadd.xlane.f32.xlu0 %v999_v63  ;;  %v980_v0 = vpop.xlane.xlu0 %979 }
 0x5eb   :  { %v984_v3 = vmul.f32 %v980_v0, %v1803_v30 }
 0x5ed   :  { %v2500_v36 = vsub.f32 %v2477_v49, %v984_v3 }
 0x5ef   :  { %v992_v4 = vmul.f32 %v2500_v36, %v2500_v36 }
 0x5f1   :  { %v1002_v9 = vsel %vm334_vm0, %v992_v4, 0.0 }
 0x5f2   :  { %1003 = vadd.xlane.f32.xlu2 %v1002_v9 }
 0x64d   :  { %v995_v40 = vpop.xlane.xlu2 %994 }
 0x64e   :  { %v1005_v44 = vmul.f32 %v995_v40, %v1803_v30 }
 0x650   :  { %v1009_v13 = vadd.f32 1e-05, %v1005_v44 }
 0x652   :  { %1445 = vrsqrt.f32 %v1009_v13  ;;  %vm1019_vm2 = vweird.f32 %v1009_v13 }
 0x655   :  { %v998_v47 = vpop.xlane.xlu1 %997 }
 0x656   :  { %v1006_v52 = vmul.f32 %v998_v47, %v1803_v30 }
 0x658   :  { %v1446_v56 = vpop.eup %1445  ;;  %v1010_v42 = vadd.f32 1e-05, %v1006_v52 }
 0x659   :  { %v1014_v14 = vmul.f32 %v1446_v56, %v1009_v13  ;;  %vm1020_vm1 = vweird.f32 %v1446_v56 }
 0x65a   :  { %1447 = vrsqrt.f32 %v1010_v42  ;;  %vm1021_vm3 = vmor %vm1019_vm2, %vm1020_vm1  ;;  %vm1029_vm5 = vweird.f32 %v1010_v42 }
 0x65b   :  { %v1015_v16 = vmul.f32 %v1446_v56, %v1014_v14 }
 0x65d   :  { %v1016_v17 = vmul.f32 0.5, %v1015_v16  ;;  %v1001_v41 = vpop.xlane.xlu0 %1000 }
 0x65e   :  { %v1007_v18 = vmul.f32 %v1001_v41, %v1803_v30 }
 0x65f   :  { %v1017_v19 = vsub.f32 1.5, %v1016_v17 }
 0x660   :  { %v1448_v20 = vpop.eup %1447  ;;  %v1011_v21 = vadd.f32 1e-05, %v1007_v18 }
 0x661   :  { %v1018_v22 = vmul.f32 %v1446_v56, %v1017_v19  ;;  %v1024_v23 = vmul.f32 %v1448_v20, %v1010_v42  ;;  %vm1030_vm4 = vweird.f32 %v1448_v20 }
 0x662   :  { %1449 = vrsqrt.f32 %v1011_v21  ;;  %vm1031_vm6 = vmor %vm1029_vm5, %vm1030_vm4  ;;  %vm1039_vm8 = vweird.f32 %v1011_v21 }
 0x663   :  { %v1022_v27 = vsel %vm1021_vm3, %v1446_v56, %v1018_v22  ;;  %v1025_v1 = vmul.f32 %v1448_v20, %v1024_v23 }
 0x664   :  { %v1053_v25 = vmul.f32 %v1022_v27, %v985_v54 }
 0x665   :  { %v1026_v6 = vmul.f32 0.5, %v1025_v1  ;;  %v1004_v7 = vpop.xlane.xlu2 %1003  ;;  %v327_v1 = vld [vmem:[%s2618_s5 + $0x70] sm:$0xff] }
 0x666   :  { %v1058_v28 = vmul.f32 %v1057_v62, %v1053_v25  ;;  %v1008_v31 = vmul.f32 %v1004_v7, %v1803_v30  ;;  %v326_v7 = vld [vmem:[%s2618_s5 + $0x68] sm:$0xff] }
 0x667   :  { %v1027_v45 = vsub.f32 1.5, %v1026_v6 }
 0x668   :  { %v1450_v8 = vpop.eup %1449  ;;  %v1012_v26 = vadd.f32 1e-05, %v1008_v31  ;;  %v1063_v59 = vadd.f32 %v1062_v51, %v1058_v28 }
 0x669   :  { %v1028_v2 = vmul.f32 %v1448_v20, %v1027_v45  ;;  %v1034_v60 = vmul.f32 %v1450_v8, %v1011_v21  ;;  %vm1040_vm7 = vweird.f32 %v1450_v8  ;;  %v328_v21 = vld [vmem:[%s2618_s5 + $0x78] sm:$0xff] }
 0x66a   :  { %1451 = vrsqrt.f32 %v1012_v26  ;;  %1382 = vmatmul.msk.f32.vlgmr.msrb.gmra.mxu1 %vm334_vm0, %v1063_v59  ;;  %vm1041_vm9 = vmor %vm1039_vm8, %vm1040_vm7  ;;  %vm1049_vm11 = vweird.f32 %v1012_v26  ;;  %1293 = vmatpush.msrb.mxu2 %v328_v21 }
 0x66b   :  { %v1032_v34 = vsel %vm1031_vm6, %v1448_v20, %v1028_v2  ;;  %v1035_v35 = vmul.f32 %v1450_v8, %v1034_v60  ;;  %1402 = vmatpush.msra.mxu3 %v328_v21  ;;  %v325_v2 = vld [vmem:[%s2618_s5 + $0x60] sm:$0xff]  ;;  %s1638_s5 = smov [#allocation11]  }
 0x66c   :  { %v1054_v38 = vmul.f32 %v1032_v34, %v2486_v53  ;;  %1294 = vmatpush.msrb.mxu2 %v327_v1  ;;  %s1340_s22 = sshll.u32 %s1638_s5, 4  ;;  %s1341_s22 = int_to_ptr.vmem [resolvable:$true] %s1340_s22 }
 0x66d   :  { %v1036_v39 = vmul.f32 0.5, %v1035_v35  ;;  %1403 = vmatpush.msra.mxu3 %v327_v1  ;;  %1348 = dma.vmem_to_hbm [thread:$0]  %s1341_s22, 2048, %s1343_s8, [#allocation12], %s1639_s23, %s1639_s23, %s1637_s17  }
 0x66e   :  { %v1059_v54 = vmul.f32 %v1057_v62, %v1054_v38  ;;  %1295 = vmatpush.msrb.mxu2 %v326_v7  ;;  %s1327_s17 = sshll.u32 %s1640_s12, 4  ;;  %s1328_s17 = int_to_ptr.vmem [resolvable:$true] %s1327_s17 }
 0x66f   :  { %v1037_v32 = vsub.f32 1.5, %v1036_v39  ;;  %1404 = vmatpush.msra.mxu3 %v326_v7 }
 0x670   :  { %v1452_v30 = vpop.eup %1451  ;;  %v1064_v46 = vadd.f32 %v1062_v51, %v1059_v54  ;;  %1296 = vmatpush.msrb.mxu2 %v325_v2 }
 0x671   :  { %v1038_v48 = vmul.f32 %v1450_v8, %v1037_v32  ;;  %v1044_v50 = vmul.f32 %v1452_v30, %v1012_v26  ;;  %vm1050_vm10 = vweird.f32 %v1452_v30  ;;  %1405 = vmatpush.msra.mxu3 %v325_v2 }
 0x672   :  { %1383 = vmatmul.msk.f32.gmra.mxu1 %vm334_vm0, %v1064_v46  ;;  %vm1051_vm12 = vmor %vm1049_vm11, %vm1050_vm10 }
 0x673   :  { %v1042_v55 = vsel %vm1041_vm9, %v1450_v8, %v1038_v48  ;;  %v1045_v57 = vmul.f32 %v1452_v30, %v1044_v50 }
 0x674   :  { %v1055_v61 = vmul.f32 %v1042_v55, %v2493_v43 }
 0x675   :  { %v1046_v37 = vmul.f32 0.5, %v1045_v57 }
 0x676   :  { %v1060_v58 = vmul.f32 %v1057_v62, %v1055_v61 }
 0x677   :  { %v1047_v63 = vsub.f32 1.5, %v1046_v37 }
 0x678   :  { %v1065_v53 = vadd.f32 %v1062_v51, %v1060_v58 }
 0x679   :  { %v1048_v0 = vmul.f32 %v1452_v30, %v1047_v63 }
 0x67a   :  { %1384 = vmatmul.msk.f32.gmra.mxu1 %vm334_vm0, %v1065_v53 }
 0x67b   :  { %v1052_v3 = vsel %vm1051_vm12, %v1452_v30, %v1048_v0 }
 0x67c   :  { %v1056_v4 = vmul.f32 %v1052_v3, %v2500_v36 }
 0x67e   :  { %v1061_v9 = vmul.f32 %v1057_v62, %v1056_v4 }
 0x680   :  { %v1066_v10 = vadd.f32 %v1062_v51, %v1061_v9 }
 0x682   :  { %1385 = vmatmul.msk.f32.gmra.mxu1 %vm334_vm0, %v1066_v10 }
 0x6e7   :  { %v1097_v43 = vpop.f32.mrf.mxu1 }
 0x6e8   :  { %v2531_v15 = vadd.f32 %v1097_v43, %v1067_v11 }
 0x6ea   :  { %v2534_v12 = vmul.f32 0.70710677, %v2531_v15 }
 0x6ec   :  { %v1117_v40 = vand.u32 2147483647, %v2534_v12  ;;  %vm1249_vm12 = vcmp.lt.f32.partialorder %v2534_v12, 0.0 }
 0x6ee   :  { %v1121_v44 = vmul.f32 0.3275911, %v1117_v40  ;;  %v1225_v59 = vsub.f32 0.0, %v1117_v40 }
 0x6ef   :  { %v1100_v13 = vpop.f32.mrf.mxu1 }
 0x6f0   :  { %v1125_v47 = vadd.f32 1.0, %v1121_v44  ;;  %v2537_v52 = vadd.f32 %v1100_v13, %v1067_v11  ;;  %v1229_v32 = vmul.f32 %v1225_v59, %v1117_v40 }
 0x6f2   :  { %1453 = vrcp.f32 %v1125_v47  ;;  %v2540_v36 = vmul.f32 0.70710677, %v2537_v52  ;;  %v1140_v22 = vand.u32 2147483648, %v1125_v47  ;;  %v1138_v27 = vand.u32 2147483647, %v1125_v47 }
 0x6f3   :  { %vm1134_vm14 = vweird.f32 %v1125_v47  ;;  %v1233_v0 = vmul.f32 1.442695, %v1229_v32 }
 0x6f4   :  { %v2543_v56 = vand.u32 2147483647, %v2540_v36  ;;  %v1141_v28 = vor.u32 1.1754944e-38, %v1140_v22  ;;  %vm1139_vm1 = vcmp.eq.f32.partialorder %v1138_v27, 8.507059e+37 }
 0x6f6   :  { %v1122_v42 = vmul.f32 0.3275911, %v2543_v56  ;;  %v1226_v43 = vsub.f32 0.0, %v2543_v56 }
 0x6f7   :  { %v1103_v14 = vpop.f32.mrf.mxu1 }
 0x6f8   :  { %v1454_v16 = vpop.eup %1453  ;;  %v2546_v17 = vadd.f32 %v1103_v14, %v1067_v11  ;;  %v1126_v18 = vadd.f32 1.0, %v1122_v42 }
 0x6f9   :  { %v1130_v41 = vmul.f32 %v1454_v16, %v1125_v47  ;;  %vm1135_vm13 = vweird.f32 %v1454_v16 }
 0x6fa   :  { %v2549_v19 = vmul.f32 0.70710677, %v2546_v17  ;;  %1455 = vrcp.f32 %v1126_v18  ;;  %vm1136_vm15 = vmor %vm1134_vm14, %vm1135_vm13  ;;  %v1155_v30 = vand.u32 2147483648, %v1126_v18  ;;  %v1153_v48 = vand.u32 2147483647, %v1126_v18 }
 0x6fb   :  { %v1131_v20 = vsub.f32 1.0, %v1130_v41  ;;  %vm1149_vm3 = vweird.f32 %v1126_v18 }
 0x6fc   :  { %v2555_v23 = vand.u32 2147483647, %v2549_v19  ;;  %v1156_v63 = vor.u32 1.1754944e-38, %v1155_v30  ;;  %vm1154_vm5 = vcmp.eq.f32.partialorder %v1153_v48, 8.507059e+37 }
 0x6fd   :  { %v1132_v62 = vmul.f32 %v1454_v16, %v1131_v20 }
 0x6fe   :  { %v1123_v25 = vmul.f32 0.3275911, %v2555_v23  ;;  %v1227_v1 = vsub.f32 0.0, %v2555_v23 }
 0x6ff   :  { %v1133_v51 = vadd.f32 %v1454_v16, %v1132_v62  ;;  %v1106_v6 = vpop.f32.mrf.mxu1 }
 0x700   :  { %v1127_v31 = vadd.f32 1.0, %v1123_v25  ;;  %v2564_v45 = vadd.f32 %v1106_v6, %v1067_v11  ;;  %v1456_v8 = vpop.eup %1455 }
 0x701   :  { %v1137_v26 = vsel %vm1136_vm15, %v1454_v16, %v1133_v51  ;;  %v1145_v34 = vmul.f32 %v1456_v8, %v1126_v18  ;;  %vm1150_vm2 = vweird.f32 %v1456_v8  ;;  %v1230_v18 = vmul.f32 %v1226_v43, %v2543_v56 }
 0x702   :  { %v1142_v60 = vsel %vm1139_vm1, %v1141_v28, %v1137_v26  ;;  %1457 = vrcp.f32 %v1127_v31  ;;  %v2570_v39 = vmul.f32 0.70710677, %v2564_v45  ;;  %vm1151_vm4 = vmor %vm1149_vm3, %vm1150_vm2  ;;  %v1168_v40 = vand.u32 2147483647, %v1127_v31 }
 0x703   :  { %v1189_v35 = vmul.f32 1.0614054, %v1142_v60  ;;  %v1146_v38 = vsub.f32 1.0, %v1145_v34  ;;  %v1170_v44 = vand.u32 2147483648, %v1127_v31  ;;  %vm1164_vm7 = vweird.f32 %v1127_v31 }
 0x704   :  { %v2573_v50 = vand.u32 2147483647, %v2570_v39  ;;  %vm1169_vm9 = vcmp.eq.f32.partialorder %v1168_v40, 8.507059e+37  ;;  %v1231_v56 = vmul.f32 %v1227_v1, %v2555_v23  ;;  %vm1250_vm15 = vcmp.lt.f32.partialorder %v2540_v36, 0.0 }
 0x705   :  { %v1193_v54 = vadd.f32 -1.4531521, %v1189_v35  ;;  %v1147_v46 = vmul.f32 %v1456_v8, %v1146_v38  ;;  %v1171_v20 = vor.u32 1.1754944e-38, %v1170_v44  ;;  %v1110_v1 = vmul.f32 0.5, %v2537_v52 }
 0x706   :  { %v1124_v61 = vmul.f32 0.3275911, %v2573_v50  ;;  %vm1251_vm1 = vcmp.lt.f32.partialorder %v2549_v19, 0.0  ;;  %vm1252_vm2 = vcmp.lt.f32.partialorder %v2570_v39, 0.0 }
 0x707   :  { %v1197_v55 = vmul.f32 %v1193_v54, %v1142_v60  ;;  %v1148_v37 = vadd.f32 %v1456_v8, %v1147_v46  ;;  %v1109_v46 = vmul.f32 0.5, %v2531_v15  ;;  %v1228_v15 = vsub.f32 0.0, %v2573_v50 }
 0x708   :  { %v1458_v57 = vpop.eup %1457  ;;  %v1128_v3 = vadd.f32 1.0, %v1124_v61  ;;  %v1237_v61 = vmul.f32 1.442695, %v1231_v56 }
 0x709   :  { %v1201_v58 = vadd.f32 1.4214138, %v1197_v55  ;;  %v1160_v53 = vmul.f32 %v1458_v57, %v1127_v31  ;;  %v1152_v4 = vsel %vm1151_vm4, %v1456_v8, %v1148_v37  ;;  %vm1165_vm6 = vweird.f32 %v1458_v57 }
 0x70a   :  { %v1157_v11 = vsel %vm1154_vm5, %v1156_v63, %v1152_v4  ;;  %1459 = vrcp.f32 %v1128_v3  ;;  %vm1166_vm8 = vmor %vm1164_vm7, %vm1165_vm6  ;;  %v1235_v8 = vmul.f32 1.442695, %v1230_v18  ;;  %v1183_v34 = vand.u32 2147483647, %v1128_v3 }
 0x70b   :  { %v1205_v9 = vmul.f32 %v1201_v58, %v1142_v60  ;;  %v1161_v10 = vsub.f32 1.0, %v1160_v53  ;;  %v1190_v42 = vmul.f32 1.0614054, %v1157_v11  ;;  %1461 = vpow2.f32 %v1233_v0 }
 0x70c   :  { %v1185_v35 = vand.u32 2147483648, %v1128_v3  ;;  %1463 = vpow2.f32 %v1235_v8  ;;  %vm1179_vm11 = vweird.f32 %v1128_v3  ;;  %vm1184_vm14 = vcmp.eq.f32.partialorder %v1183_v34, 8.507059e+37 }
 0x70d   :  { %v1209_v13 = vadd.f32 -0.28449672, %v1205_v9  ;;  %v1162_v47 = vmul.f32 %v1458_v57, %v1161_v10  ;;  %v1194_v16 = vadd.f32 -1.4531521, %v1190_v42  ;;  %1465 = vpow2.f32 %v1237_v61 }
 0x70e   :  { %v1186_v23 = vor.u32 1.1754944e-38, %v1185_v35 }
 0x70f   :  { %v1213_v14 = vmul.f32 %v1209_v13, %v1142_v60  ;;  %v1163_v41 = vadd.f32 %v1458_v57, %v1162_v47  ;;  %v1198_v22 = vmul.f32 %v1194_v16, %v1157_v11  ;;  %v1232_v47 = vmul.f32 %v1228_v15, %v2573_v50 }
 0x710   :  { %v1460_v27 = vpop.eup %1459 }
 0x711   :  { %v1217_v21 = vadd.f32 0.2548296, %v1213_v14  ;;  %v1167_v62 = vsel %vm1166_vm8, %v1458_v57, %v1163_v41  ;;  %v1175_v6 = vmul.f32 %v1460_v27, %v1128_v3  ;;  %v1202_v7 = vadd.f32 1.4214138, %v1198_v22  ;;  %v1462_v28 = vpop.eup %1461 }
 0x712   :  { %v1172_v25 = vsel %vm1169_vm9, %v1171_v20, %v1167_v62  ;;  %vm1180_vm10 = vweird.f32 %v1460_v27  ;;  %v1464_v40 = vpop.eup %1463 }
 0x713   :  { %v1221_v51 = vmul.f32 %v1217_v21, %v1142_v60  ;;  %v1191_v31 = vmul.f32 1.0614054, %v1172_v25  ;;  %v1176_v59 = vsub.f32 1.0, %v1175_v6  ;;  %v1206_v2 = vmul.f32 %v1202_v7, %v1157_v11  ;;  %vm1181_vm13 = vmor %vm1179_vm11, %vm1180_vm10  ;;  %v1466_v22 = vpop.eup %1465 }
 0x714   :  { %v1239_v21 = vmul.f32 1.442695, %v1232_v47 }
 0x715   :  { %v1241_v26 = vmul.f32 %v1462_v28, %v1221_v51  ;;  %v1195_v38 = vadd.f32 -1.4531521, %v1191_v31  ;;  %v1177_v32 = vmul.f32 %v1460_v27, %v1176_v59  ;;  %v1210_v30 = vadd.f32 -0.28449672, %v1206_v2 }
 0x716   :  { %1467 = vpow2.f32 %v1239_v21 }
 0x717   :  { %v1245_v54 = vsub.f32 1.0, %v1241_v26  ;;  %v1199_v60 = vmul.f32 %v1195_v38, %v1172_v25  ;;  %v1178_v55 = vadd.f32 %v1460_v27, %v1177_v32  ;;  %v1214_v57 = vmul.f32 %v1210_v30, %v1157_v11 }
 0x718   :  { %v1112_v32 = vmul.f32 0.5, %v2564_v45 }
 0x719   :  { %v1253_v48 = vsub.f32 0.0, %v1245_v54  ;;  %v1203_v37 = vadd.f32 1.4214138, %v1199_v60  ;;  %v1182_v63 = vsel %vm1181_vm13, %v1460_v27, %v1178_v55  ;;  %v1218_v53 = vadd.f32 0.2548296, %v1214_v57 }
 0x71a   :  { %v1187_v4 = vsel %vm1184_vm14, %v1186_v23, %v1182_v63 }
 0x71b   :  { %v1257_v58 = vsel %vm1249_vm12, %v1253_v48, %v1245_v54  ;;  %v1207_v9 = vmul.f32 %v1203_v37, %v1172_v25  ;;  %v1192_v10 = vmul.f32 1.0614054, %v1187_v4  ;;  %v1222_v43 = vmul.f32 %v1218_v53, %v1157_v11 }
 0x71c   :  { %v1261_v0 = vadd.f32 1.0, %v1257_v58  ;;  %v1468_v56 = vpop.eup %1467 }
 0x71d   :  { %v1211_v44 = vadd.f32 -0.28449672, %v1207_v9  ;;  %v1196_v12 = vadd.f32 -1.4531521, %v1192_v10  ;;  %v1242_v13 = vmul.f32 %v1464_v40, %v1222_v43 }
 0x71e   :  { %v1265_v3 = vmul.f32 %v1261_v0, %v1109_v46 }
 0x71f   :  { %v1215_v42 = vmul.f32 %v1211_v44, %v1172_v25  ;;  %v1200_v14 = vmul.f32 %v1196_v12, %v1187_v4  ;;  %v1246_v16 = vsub.f32 1.0, %v1242_v13 }
 0x720   :  { %1386 = vmatmul.msk.f32.vlgmr.msrb.gmra.mxu2 %vm334_vm0, %v1265_v3 }
 0x721   :  { %v1219_v41 = vadd.f32 0.2548296, %v1215_v42  ;;  %v1204_v18 = vadd.f32 1.4214138, %v1200_v14  ;;  %v1254_v20 = vsub.f32 0.0, %v1246_v16 }
 0x723   :  { %v1223_v11 = vmul.f32 %v1219_v41, %v1172_v25  ;;  %v1208_v62 = vmul.f32 %v1204_v18, %v1187_v4  ;;  %v1258_v27 = vsel %vm1250_vm15, %v1254_v20, %v1246_v16  ;;  %v1111_v25 = vmul.f32 0.5, %v2546_v17 }
 0x724   :  { %v1262_v51 = vadd.f32 1.0, %v1258_v27  ;;  %v1314_v17 = vperm.slane %v2450_v24, 3 }
 0x725   :  { %v1243_v6 = vmul.f32 %v1466_v22, %v1223_v11  ;;  %v1212_v50 = vadd.f32 -0.28449672, %v1208_v62 }
 0x726   :  { %v1266_v7 = vmul.f32 %v1262_v51, %v1110_v1 }
 0x727   :  { %v1247_v28 = vsub.f32 1.0, %v1243_v6  ;;  %v1216_v8 = vmul.f32 %v1212_v50, %v1187_v4 }
 0x728   :  { %1387 = vmatmul.msk.f32.gmra.mxu2 %vm334_vm0, %v1266_v7 }
 0x729   :  { %v1255_v31 = vsub.f32 0.0, %v1247_v28  ;;  %v1220_v36 = vadd.f32 0.2548296, %v1216_v8 }
 0x72b   :  { %v1259_v26 = vsel %vm1251_vm1, %v1255_v31, %v1247_v28  ;;  %v1224_v59 = vmul.f32 %v1220_v36, %v1187_v4 }
 0x72c   :  { %v1263_v2 = vadd.f32 1.0, %v1259_v26 }
 0x72d   :  { %v1244_v52 = vmul.f32 %v1468_v56, %v1224_v59 }
 0x72e   :  { %v1267_v34 = vmul.f32 %v1263_v2, %v1111_v25 }
 0x72f   :  { %v1248_v35 = vsub.f32 1.0, %v1244_v52 }
 0x730   :  { %1388 = vmatmul.msk.f32.gmra.mxu2 %vm334_vm0, %v1267_v34 }
 0x731   :  { %v1256_v38 = vsub.f32 0.0, %v1248_v35 }
 0x733   :  { %v1260_v54 = vsel %vm1252_vm2, %v1256_v38, %v1248_v35 }
 0x734   :  { %v1264_v30 = vadd.f32 1.0, %v1260_v54 }
 0x736   :  { %v1268_v19 = vmul.f32 %v1264_v30, %v1112_v32 }
 0x738   :  { %1389 = vmatmul.msk.f32.vlgmr.msra.gmra.mxu3 %vm334_vm0, %v1268_v19 }
 0x7a3   :  { %v1298_v39 = vpop.f32.mrf.mxu2 }
 0x7a4   :  { %v1310_v45 = vadd.f32 %v1298_v39, %v2456_v5 }
 0x7a6   :  { %v1315_v46 = vadd.f32 %v1314_v17, %v1310_v45 }
 0x7a8   :  { %1319 = vst.msk [vmem:[#allocation10] sm:$0xff] %vm334_vm0, %v1315_v46 }
 0x7ab   :  { %v1301_v60 = vpop.f32.mrf.mxu2 }
 0x7ac   :  { %v1311_v48 = vadd.f32 %v1301_v60, %v2463_v29 }
 0x7ae   :  { %v1316_v55 = vadd.f32 %v1314_v17, %v1311_v48 }
 0x7b0   :  { %1320 = vst.msk [vmem:[#allocation10 + $0x8] sm:$0xff] %vm334_vm0, %v1316_v55 }
 0x7b3   :  { %v1304_v57 = vpop.f32.mrf.mxu2 }
 0x7b4   :  { %v1312_v61 = vadd.f32 %v1304_v57, %v2470_v33 }
 0x7b6   :  { %v1317_v23 = vadd.f32 %v1314_v17, %v1312_v61 }
 0x7b8   :  { %1321 = vst.msk [vmem:[#allocation10 + $0x10] sm:$0xff] %vm334_vm0, %v1317_v23 }
 0x7bb   :  { %v1307_v37 = vpop.f32.mrf.mxu3 }
 0x7bc   :  { %v1313_v24 = vadd.f32 %v1307_v37, %v2477_v49 }
 0x7be   :  { %v1318_v5 = vadd.f32 %v1314_v17, %v1313_v24 }
 0x7c0   :  { %1322 = vst.msk [vmem:[#allocation10 + $0x18] sm:$0xff] %vm334_vm0, %v1318_v5 }
 0x7c1   :  { %1335 = dma.vmem_to_hbm [thread:$0]  %s1328_s17, 512, %s1330_s26, [#allocation4], %s1629_s29, %s1629_s29, %s1630_s30  }
 0x7c2   :  { %1624 = dma.done.wait [#allocation4], 512  }
 0x7c3   :  { %1625 = vsyncadd [#allocation4], 4294966784 }
 0x7c4   :  { %1626 = dma.done.wait [#allocation12], 2048  }
 0x7c5   :  { %1627 = vsyncadd [#allocation12], 4294965248 }
 0x7c6   :  { %1357 = vsyncpa [#allocation3], 1 }
 0x7c7   :  { %1358 = vsyncpa [#allocation6], 1 }
 0x7c8   :  { %1359 = vsyncpa [#allocation9], 1 }
 0x7c9   :  { %1360 = vsyncpa [#allocation4], 1 }
 0x7ca   :  { %1361 = vsyncpa [#allocation12], 1 }

</bundles_post_ra>
